<compile_context>
chip_gen: v5e
topology: v5e:2x2
jax: 0.10.0
libtpu: 0.0.40
codegen_flags: <defaults>
</compile_context>

<pallas_src>
import functools

import jax
import jax.numpy as jnp
import numpy as np
from jax.experimental import pallas as pl
from jax.experimental.pallas import tpu as pltpu

# ---------------- model hyper-parameters (small, self-consistent) ----------------
N_NODE_FEAT = 16
N_EDGE_FEAT = 8
TIME_DIM = 12
OUT_DIM = 16                     # merger requires out_dim == n_node_features
N_HEAD = 2
D_K = OUT_DIM // N_HEAD
SCALE = float(D_K) ** -0.5
QUERY_DIM = N_NODE_FEAT + TIME_DIM              # 28
KEY_DIM = N_NODE_FEAT + TIME_DIM + N_EDGE_FEAT  # 36
IN_DIM = QUERY_DIM + KEY_DIM                    # 64  (src_vec | tgt_vec)
QKV_DIM = 3 * OUT_DIM                           # 48

# step-flag bits (scalar-prefetch metadata)
_F_INIT, _F_STEP, _F_FINAL = 1, 2, 4


def _head_matrices():
    """Block-indicator matrices mapping feature lanes <-> heads (host constants)."""
    d = np.arange(OUT_DIM)[:, None]
    h = np.arange(N_HEAD)[None, :]
    hsum = (d // D_K == h).astype(np.float32)            # [OUT_DIM, H]  sum-within-head
    hexp = np.ascontiguousarray(hsum.T)                  # [H, OUT_DIM]  head -> lanes
    return jnp.asarray(hsum), jnp.asarray(hexp)


# ---------------------------------- Pallas kernel --------------------------------
def _attn_kernel(st_ref, sb_ref, fl_ref,     # SMEM [S, s_max] int32: tile / block / flags per step
                 x_ref,                      # [E_TILE, IN_DIM] bf16 (CSR-sorted src|tgt edge vectors)
                 ni_col_ref,                 # [E_TILE, 1] int32  destination node id per edge
                 ni_row_ref,                 # [1, E_TILE] int32  same ids, lane-major
                 nfeat_ref,                  # [N_TILE, F] f32
                 hsum_ref, hexp_ref,         # head indicator matrices (hoisted)
                 wqkv_ref, bqkv_ref,         # fused q|k|v projection
                 w1a_ref, w1b_ref, b1_ref,   # MergeLayer fc1 (split -> no concat in kernel)
                 w2_ref, b2_ref,             # MergeLayer fc2
                 out_ref,                    # [N_TILE, OUT_DIM] f32
                 m_sc, l_sc, acc_sc):        # online-softmax accumulators (VMEM scratch)
    f32 = jnp.float32
    c = pl.program_id(0)
    i = pl.program_id(1)
    flag = fl_ref[c, i]
    t = st_ref[c, i]

    e_tile = x_ref.shape[0]
    n_tile = acc_sc.shape[0]
    base = t * n_tile

    @pl.when((flag & _F_INIT) != 0)
    def _init():
        m_sc[...] = jnp.full(m_sc.shape, -1e30, m_sc.dtype)
        l_sc[...] = jnp.zeros(l_sc.shape, l_sc.dtype)
        acc_sc[...] = jnp.zeros(acc_sc.shape, acc_sc.dtype)

    @pl.when((flag & _F_STEP) != 0)
    def _step():
        # ---- fused q|k|v projection: one wide bf16 MXU matmul + column-masked ReLU ----
        y = jnp.dot(x_ref[...], wqkv_ref[...], preferred_element_type=f32) + bqkv_ref[...]
        col = jax.lax.broadcasted_iota(jnp.int32, (1, QKV_DIM), 1)
        qkv = jnp.where(col < 2 * OUT_DIM, jnp.maximum(y, 0.0), y)  # ReLU on q,k only
        q = qkv[:, :OUT_DIM]
        k = qkv[:, OUT_DIM:2 * OUT_DIM]
        v = qkv[:, 2 * OUT_DIM:]

        # ---- per-head logits via block-indicator matmul (no per-head slice loop) ----
        s = jnp.dot(q * k, hsum_ref[...], preferred_element_type=f32) * SCALE  # [E, H]

        # Mask edges not owned by this node tile (boundary blocks / pad sentinels).
        ni = ni_col_ref[...]                                          # [E, 1]
        in_tile = (ni >= base) & (ni < base + n_tile)
        s = jnp.where(in_tile, s, jnp.float32(-1e30))

        # ---- online softmax with a running per-head BLOCK max (scalar per head) ----
        m_blk = jnp.max(s, axis=0, keepdims=True)                     # [1, H]
        m_new = jnp.maximum(m_sc[...], m_blk)
        alpha = jnp.exp(m_sc[...] - m_new)                            # [1, H]
        m_sc[...] = m_new

        p = jnp.exp(s - m_new)                                        # [E, H], masked rows -> 0
        p_lanes = jnp.dot(p, hexp_ref[...], preferred_element_type=f32)   # [E, OUT_DIM]

        # ---- fused bf16 segment-sum: one oh_ne @ [p | p*v] matmul, f32 accumulate ----
        packed = jnp.concatenate([p, p_lanes * v], axis=1).astype(jnp.bfloat16)
        sub_n = jax.lax.broadcasted_iota(jnp.int32, (n_tile, e_tile), 0) + base
        oh_ne = (sub_n == ni_row_ref[...]).astype(jnp.bfloat16)       # [N, E]
        seg = jnp.dot(oh_ne, packed, preferred_element_type=f32)      # [N, H+OUT_DIM]

        alpha_lanes = jnp.dot(alpha, hexp_ref[...], preferred_element_type=f32)  # [1, OUT_DIM]
        l_sc[...] = l_sc[...] * alpha + seg[:, :N_HEAD]
        acc_sc[...] = acc_sc[...] * alpha_lanes + seg[:, N_HEAD:]

    @pl.when((flag & _F_FINAL) != 0)
    def _finalize():
        l = l_sc[...]
        inv_l = jnp.where(l > 0, pl.reciprocal(l, approx=True), 0.0)  # EUP, NaN-free
        out_emb = acc_sc[...] * jnp.dot(inv_l, hexp_ref[...], preferred_element_type=f32)
        # MergeLayer: fc2(ReLU(fc1(cat([node_rep, node_feat])))), fc1 weight pre-split.
        h1 = jnp.maximum(
            jnp.dot(out_emb, w1a_ref[...], preferred_element_type=f32)
            + jnp.dot(nfeat_ref[...], w1b_ref[...], preferred_element_type=f32)
            + b1_ref[...], 0.0)
        out_ref[...] = jnp.dot(h1, w2_ref[...], preferred_element_type=f32) + b2_ref[...]


# ------------------------------ JAX glue (preprocess) -----------------------------
def _round_up(x, m):
    return ((x + m - 1) // m) * m


def preprocess(node_feature, edge_index, edge_feature, src_time_features, edge_time):
    # reverse_edge
    rev = jnp.stack([edge_index[:, 1], edge_index[:, 0]], axis=1)
    edge_index = jnp.concatenate([edge_index, rev], axis=0)
    edge_feature = jnp.concatenate([edge_feature, edge_feature], axis=0)
    src_time_features = jnp.concatenate([src_time_features, src_time_features], axis=0)
    edge_time = jnp.concatenate([edge_time, edge_time], axis=0)
    # add_selfloop
    n = node_feature.shape[0]
    time_emb_unit = src_time_features[0:1, :]
    node_id = jnp.arange(n, dtype=edge_index.dtype).reshape(-1, 1)
    edge_index = jnp.concatenate([edge_index, jnp.tile(node_id, (1, 2))], axis=0)
    edge_feature = jnp.concatenate(
        [edge_feature, jnp.zeros((n, edge_feature.shape[1]), edge_feature.dtype)], axis=0)
    src_time_features = jnp.concatenate(
        [src_time_features, jnp.tile(time_emb_unit, (n, 1))], axis=0)
    edge_time = jnp.concatenate([edge_time, jnp.tile(time_emb_unit, (n, 1))], axis=0)
    return edge_index, edge_feature, src_time_features, edge_time


def _fuse_params(params):
    (wq, bq, wk, bk, wv, bv, w1, b1, w2, b2) = params
    w_qkv = jnp.zeros((IN_DIM, QKV_DIM), jnp.float32)
    w_qkv = w_qkv.at[:QUERY_DIM, :OUT_DIM].set(wq)
    w_qkv = w_qkv.at[QUERY_DIM:, OUT_DIM:2 * OUT_DIM].set(wk)
    w_qkv = w_qkv.at[QUERY_DIM:, 2 * OUT_DIM:].set(wv)
    b_qkv = jnp.concatenate([bq, bk, bv], axis=1)
    w1a, w1b = w1[:OUT_DIM], w1[OUT_DIM:]     # fc1 split: node_rep part / node_feat part
    return w_qkv.astype(jnp.bfloat16), b_qkv, w1a, w1b, b1, w2, b2


def _build_csr_steps(nblk, blk_start, tile_base, s_max, num_edge_blocks):
    """Flattened (tile, block, flags) step arrays for one grid split (static length)."""
    ts = nblk.shape[0]
    offs = jnp.concatenate(
        [jnp.zeros((1,), jnp.int32), jnp.cumsum(nblk).astype(jnp.int32)])
    total = offs[-1]                                   # >= 1 (every tile owns >= 1 block)
    steps = jnp.arange(s_max, dtype=jnp.int32)
    idx = jnp.minimum(steps, total - 1)                # padded steps replay the last real one
    tloc = jnp.clip(jnp.searchsorted(offs, idx, side="right") - 1, 0, ts - 1).astype(jnp.int32)
    within = idx - offs[tloc]
    st = (tloc + tile_base).astype(jnp.int32)
    sb = jnp.minimum(blk_start[tloc] + within, num_edge_blocks - 1).astype(jnp.int32)
    valid = steps < total
    first = valid & (within == 0)
    last = valid & (within == nblk[tloc] - 1)
    flags = (first.astype(jnp.int32) * _F_INIT
             | valid.astype(jnp.int32) * _F_STEP
             | last.astype(jnp.int32) * _F_FINAL)
    return st, sb, flags


@functools.partial(jax.jit, static_argnames=("n_tile", "e_tile"))
def temporal_attention_forward(node_feature, edge_index, edge_feature,
                               src_time_features, edge_time, params,
                               n_tile=256, e_tile=4096):
    assert n_tile % 8 == 0 and e_tile % 128 == 0
    ei, ef, stf, et = preprocess(node_feature, edge_index, edge_feature,
                                 src_time_features, edge_time)
    node_i = ei[:, 0].astype(jnp.int32)
    node_j = ei[:, 1]
    # Build the edge matrix directly in bf16 (halves gather/sort HBM traffic; MXU eats bf16).
    nf16 = node_feature.astype(jnp.bfloat16)
    src_vec = jnp.concatenate([nf16[node_i], stf.astype(jnp.bfloat16)], axis=1)
    tgt_vec = jnp.concatenate([nf16[node_j], ef.astype(jnp.bfloat16),
                               et.astype(jnp.bfloat16)], axis=1)
    x = jnp.concatenate([src_vec, tgt_vec], axis=1)                  # [E, IN_DIM] bf16

    n = node_feature.shape[0]
    e = x.shape[0]
    n_pad = _round_up(n, n_tile)
    e_pad = _round_up(e, e_tile)
    num_node_tiles = n_pad // n_tile
    num_edge_blocks = e_pad // e_tile

    # ---- CSR: sort edges by destination node; pad with an out-of-range sentinel ----
    ni_padded = jnp.concatenate([node_i, jnp.full((e_pad - e,), n_pad, jnp.int32)])
    x_padded = jnp.concatenate([x, jnp.zeros((e_pad - e, IN_DIM), x.dtype)], axis=0)
    order = jnp.argsort(ni_padded)
    ni_sorted = ni_padded[order].astype(jnp.int32)
    x_sorted = x_padded[order]
    ni_col = ni_sorted.reshape(e_pad, 1)
    ni_row = ni_sorted.reshape(1, e_pad)

    # per-node-tile edge-block range
    bounds = jnp.searchsorted(
        ni_sorted, jnp.arange(num_node_tiles + 1, dtype=jnp.int32) * n_tile,
        side="left").astype(jnp.int32)
    start_e, end_e = bounds[:-1], bounds[1:]
    blk_start = jnp.clip(start_e // e_tile, 0, num_edge_blocks - 1)
    blk_end = jnp.clip((end_e + e_tile - 1) // e_tile, 1, num_edge_blocks)
    nblk = jnp.maximum(blk_end - blk_start, 1)         # every tile owns >= 1 block (self-loops)

    # ---- flatten to a CSR step list; 2 splits keep v7x's two TensorCores busy ----
    num_splits = 2 if num_node_tiles >= 2 else 1
    half = (num_node_tiles + num_splits - 1) // num_splits
    s_max = num_edge_blocks + half                     # static worst-case steps per split
    parts = []
    for c in range(num_splits):
        lo = c * half
        hi = min((c + 1) * half, num_node_tiles)
        parts.append(_build_csr_steps(nblk[lo:hi], blk_start[lo:hi], lo, s_max,
                                      num_edge_blocks))
    step_tile = jnp.stack([p[0] for p in parts])       # [S, s_max] int32
    step_blk = jnp.stack([p[1] for p in parts])
    step_flag = jnp.stack([p[2] for p in parts])

    nfeat_pad = jnp.concatenate(
        [node_feature,
         jnp.zeros((n_pad - n, node_feature.shape[1]), node_feature.dtype)], axis=0)
    hsum, hexp = _head_matrices()
    w_qkv, b_qkv, w1a, w1b, b1, w2, b2 = _fuse_params(params)

    def full(arr):
        return pl.BlockSpec(arr.shape, lambda c, i, st, sb, fl: (0,) * arr.ndim)

    grid_spec = pltpu.PrefetchScalarGridSpec(
        num_scalar_prefetch=3,
        grid=(num_splits, s_max),
        in_specs=[
            pl.BlockSpec((e_tile, IN_DIM), lambda c, i, st, sb, fl: (sb[c, i], 0)),
            pl.BlockSpec((e_tile, 1), lambda c, i, st, sb, fl: (sb[c, i], 0)),
            pl.BlockSpec((1, e_tile), lambda c, i, st, sb, fl: (0, sb[c, i])),
            pl.BlockSpec((n_tile, N_NODE_FEAT), lambda c, i, st, sb, fl: (st[c, i], 0)),
            full(hsum), full(hexp),
            full(w_qkv), full(b_qkv), full(w1a), full(w1b), full(b1), full(w2), full(b2),
        ],
        out_specs=pl.BlockSpec((n_tile, OUT_DIM), lambda c, i, st, sb, fl: (st[c, i], 0)),
        scratch_shapes=[
            pltpu.VMEM((1, N_HEAD), jnp.float32),       # running per-head block max
            pltpu.VMEM((n_tile, N_HEAD), jnp.float32),  # running denom
            pltpu.VMEM((n_tile, OUT_DIM), jnp.float32), # running weighted sum
        ],
    )

    out_pad = pl.pallas_call(
        _attn_kernel,
        out_shape=jax.ShapeDtypeStruct((n_pad, OUT_DIM), jnp.float32),
        grid_spec=grid_spec,
        compiler_params=pltpu.CompilerParams(
            dimension_semantics=("parallel", "arbitrary"),   # split axis across TCs (v7x)
            vmem_limit_bytes=32 * 1024 * 1024),
    )(step_tile, step_blk, step_flag,
      x_sorted, ni_col, ni_row, nfeat_pad,
      hsum, hexp, w_qkv, b_qkv, w1a, w1b, b1, w2, b2)
    return out_pad[:n]


# ------------------------------ pure-JAX reference --------------------------------
def reference_forward(node_feature, edge_index, edge_feature,
                      src_time_features, edge_time, params):
    (wq, bq, wk, bk, wv, bv, w1, b1, w2, b2) = params
    ei, ef, stf, et = preprocess(node_feature, edge_index, edge_feature,
                                 src_time_features, edge_time)
    node_i = ei[:, 0]
    node_j = ei[:, 1]
    src_vec = jnp.concatenate([node_feature[node_i], stf], axis=1)
    tgt_vec = jnp.concatenate([node_feature[node_j], ef, et], axis=1)
    n = node_feature.shape[0]

    q = jax.nn.relu(src_vec @ wq + bq).reshape(-1, N_HEAD, D_K)
    k = jax.nn.relu(tgt_vec @ wk + bk).reshape(-1, N_HEAD, D_K)
    v = (tgt_vec @ wv + bv).reshape(-1, N_HEAD, D_K)
    s = jnp.sum(q * k, axis=-1) * SCALE                       # [E, H]

    m = jax.ops.segment_max(s, node_i, num_segments=n)        # [N, H]
    p = jnp.exp(s - m[node_i])
    denom = jax.ops.segment_sum(p, node_i, num_segments=n)
    scores = p / denom[node_i]                                # [E, H]

    weighted = (scores[:, :, None] * v).reshape(-1, OUT_DIM)
    out_emb = jax.ops.segment_sum(weighted, node_i, num_segments=n)

    x = jnp.concatenate([out_emb, node_feature], axis=1)
    h1 = jax.nn.relu(x @ w1 + b1)
    return h1 @ w2 + b2


# --------------------------------------- main -------------------------------------
def init_params(key):
    ks = jax.random.split(key, 10)

    def lin(kw, kb, din, dout):
        w = jax.random.normal(kw, (din, dout), jnp.float32) * 0.1
        b = jax.random.normal(kb, (1, dout), jnp.float32) * 0.1
        return w, b

    wq, bq = lin(ks[0], ks[1], QUERY_DIM, OUT_DIM)
    wk, bk = lin(ks[2], ks[3], KEY_DIM, OUT_DIM)
    wv, bv = lin(ks[4], ks[5], KEY_DIM, OUT_DIM)
    w1, b1 = lin(ks[6], ks[7], 2 * N_NODE_FEAT, N_NODE_FEAT)   # MergeLayer.fc1
    w2, b2 = lin(ks[8], ks[9], N_NODE_FEAT, OUT_DIM)           # MergeLayer.fc2
    return (wq, bq, wk, bk, wv, bv, w1, b1, w2, b2)


if __name__ == "__main__":
    key = jax.random.PRNGKey(0)
    k_nf, k_ei, k_ef, k_st, k_et, k_p = jax.random.split(key, 6)

    N_NODES = 20
    N_EDGES = 60   # after reverse + self-loops the kernel sees 2*60 + 20 = 140 edges

    node_feature = jax.random.normal(k_nf, (N_NODES, N_NODE_FEAT), jnp.float32)
    edge_index = jax.random.randint(k_ei, (N_EDGES, 2), 0, N_NODES, dtype=jnp.int32)
    edge_feature = jax.random.normal(k_ef, (N_EDGES, N_EDGE_FEAT), jnp.float32)
    src_time_features = jax.random.normal(k_st, (N_EDGES, TIME_DIM), jnp.float32)
    edge_time = jax.random.normal(k_et, (N_EDGES, TIME_DIM), jnp.float32)
    params = init_params(k_p)

    ref = jax.block_until_ready(reference_forward(
        node_feature, edge_index, edge_feature, src_time_features, edge_time, params))

    # Config 1: tiny tiles -> multi node-tile / multi edge-block CSR grid with a 2-way
    # parallel split; exercises init/finalize flags, boundary blocks and masking.
    out_a = jax.block_until_ready(temporal_attention_forward(
        node_feature, edge_index, edge_feature, src_time_features, edge_time, params,
        n_tile=8, e_tile=128))
    # Config 2: larger, production-style tiles (single tile / single block at toy size).
    out_b = jax.block_until_ready(temporal_attention_forward(
        node_feature, edge_index, edge_feature, src_time_features, edge_time, params,
        n_tile=128, e_tile=512))

    assert out_a.shape == (N_NODES, OUT_DIM) and out_b.shape == (N_NODES, OUT_DIM)
    np.testing.assert_allclose(np.asarray(out_a), np.asarray(ref), rtol=2e-2, atol=2e-2)
    np.testing.assert_allclose(np.asarray(out_b), np.asarray(ref), rtol=2e-2, atol=2e-2)
    print("KERNEL_OK")
</pallas_src>

<mosaic_0001>
module attributes {stable_mosaic.version = 11 : i64} {
  func.func @_attn_kernel(%arg0: i32, %arg1: i32, %arg2: memref<2x4xi32, #tpu.memory_space<smem>>, %arg3: memref<2x4xi32, #tpu.memory_space<smem>>, %arg4: memref<2x4xi32, #tpu.memory_space<smem>>, %arg5: memref<128x64xbf16, #tpu.memory_space<vmem>>, %arg6: memref<128x1xi32, #tpu.memory_space<vmem>>, %arg7: memref<1x128xi32, #tpu.memory_space<vmem>>, %arg8: memref<8x16xf32, #tpu.memory_space<vmem>>, %arg9: memref<16x2xf32, #tpu.memory_space<vmem>>, %arg10: memref<2x16xf32, #tpu.memory_space<vmem>>, %arg11: memref<64x48xbf16, #tpu.memory_space<vmem>>, %arg12: memref<1x48xf32, #tpu.memory_space<vmem>>, %arg13: memref<16x16xf32, #tpu.memory_space<vmem>>, %arg14: memref<16x16xf32, #tpu.memory_space<vmem>>, %arg15: memref<1x16xf32, #tpu.memory_space<vmem>>, %arg16: memref<16x16xf32, #tpu.memory_space<vmem>>, %arg17: memref<1x16xf32, #tpu.memory_space<vmem>>, %arg18: memref<8x16xf32, #tpu.memory_space<vmem>>, %arg19: memref<1x2xf32, #tpu.memory_space<vmem>>, %arg20: memref<8x2xf32, #tpu.memory_space<vmem>>, %arg21: memref<8x16xf32, #tpu.memory_space<vmem>>) attributes {dimension_semantics = [#tpu.dimension_semantics<parallel>, #tpu.dimension_semantics<arbitrary>], iteration_bounds = array<i64: 2, 4>, scalar_prefetch = 3 : i64, scratch_operands = 3 : i64, tpu.core_type = #tpu.core_type<tc>, window_params = [{transform_indices = @transform_0, window_bounds = array<i64: 128, 64>}, {transform_indices = @transform_1, window_bounds = array<i64: 128, 1>}, {transform_indices = @transform_2, window_bounds = array<i64: 1, 128>}, {transform_indices = @transform_3, window_bounds = array<i64: 8, 16>}, {pipeline_mode = #tpu.pipeline_mode<synchronous>, transform_indices = @transform_4, window_bounds = array<i64: 16, 2>}, {pipeline_mode = #tpu.pipeline_mode<synchronous>, transform_indices = @transform_5, window_bounds = array<i64: 2, 16>}, {pipeline_mode = #tpu.pipeline_mode<synchronous>, transform_indices = @transform_6, window_bounds = array<i64: 64, 48>}, {pipeline_mode = #tpu.pipeline_mode<synchronous>, transform_indices = @transform_7, window_bounds = array<i64: 1, 48>}, {pipeline_mode = #tpu.pipeline_mode<synchronous>, transform_indices = @transform_8, window_bounds = array<i64: 16, 16>}, {pipeline_mode = #tpu.pipeline_mode<synchronous>, transform_indices = @transform_9, window_bounds = array<i64: 16, 16>}, {pipeline_mode = #tpu.pipeline_mode<synchronous>, transform_indices = @transform_10, window_bounds = array<i64: 1, 16>}, {pipeline_mode = #tpu.pipeline_mode<synchronous>, transform_indices = @transform_11, window_bounds = array<i64: 16, 16>}, {pipeline_mode = #tpu.pipeline_mode<synchronous>, transform_indices = @transform_12, window_bounds = array<i64: 1, 16>}, {transform_indices = @transform_13, window_bounds = array<i64: 8, 16>}]} {
    %0 = arith.index_cast %arg0 : i32 to index
    %1 = arith.index_cast %arg1 : i32 to index
    %2 = memref.load %arg4[%0, %1] : memref<2x4xi32, #tpu.memory_space<smem>>
    %3 = arith.index_cast %arg0 : i32 to index
    %4 = arith.index_cast %arg1 : i32 to index
    %5 = memref.load %arg2[%3, %4] : memref<2x4xi32, #tpu.memory_space<smem>>
    %c8_i32 = arith.constant 8 : i32
    %6 = arith.muli %5, %c8_i32 : i32
    %c1_i32 = arith.constant 1 : i32
    %7 = arith.andi %2, %c1_i32 : i32
    %c0_i32 = arith.constant 0 : i32
    %8 = arith.cmpi ne, %7, %c0_i32 : i32
    %9 = arith.extui %8 : i1 to i32
    %c0_i32_0 = arith.constant 0 : i32
    %10 = arith.cmpi ne, %9, %c0_i32_0 : i32
    scf.if %10 {
      %cst = arith.constant -1.000000e+30 : f32
      %19 = vector.broadcast %cst : f32 to vector<1x2xf32>
      %c0 = arith.constant 0 : index
      %c0_5 = arith.constant 0 : index
      %20 = vector.load %arg19[%c0, %c0_5] : memref<1x2xf32, #tpu.memory_space<vmem>>, vector<1x2xf32>
      tpu.vector_store %arg19[%c0, %c0_5], %19 {strides = array<i32>} : memref<1x2xf32, #tpu.memory_space<vmem>>, vector<1x2xf32>,
      %cst_6 = arith.constant 0.000000e+00 : f32
      %21 = vector.broadcast %cst_6 : f32 to vector<8x2xf32>
      %c0_7 = arith.constant 0 : index
      %c0_8 = arith.constant 0 : index
      %22 = vector.load %arg20[%c0_7, %c0_8] : memref<8x2xf32, #tpu.memory_space<vmem>>, vector<8x2xf32>
      tpu.vector_store %arg20[%c0_7, %c0_8], %21 {strides = array<i32>} : memref<8x2xf32, #tpu.memory_space<vmem>>, vector<8x2xf32>,
      %cst_9 = arith.constant 0.000000e+00 : f32
      %23 = vector.broadcast %cst_9 : f32 to vector<8x16xf32>
      %c0_10 = arith.constant 0 : index
      %c0_11 = arith.constant 0 : index
      %24 = vector.load %arg21[%c0_10, %c0_11] : memref<8x16xf32, #tpu.memory_space<vmem>>, vector<8x16xf32>
      tpu.vector_store %arg21[%c0_10, %c0_11], %23 {strides = array<i32>} : memref<8x16xf32, #tpu.memory_space<vmem>>, vector<8x16xf32>,
    } else {
    }
    %c2_i32 = arith.constant 2 : i32
    %11 = arith.andi %2, %c2_i32 : i32
    %c0_i32_1 = arith.constant 0 : i32
    %12 = arith.cmpi ne, %11, %c0_i32_1 : i32
    %13 = arith.extui %12 : i1 to i32
    %c0_i32_2 = arith.constant 0 : i32
    %14 = arith.cmpi ne, %13, %c0_i32_2 : i32
    scf.if %14 {
      %c0 = arith.constant 0 : index
      %c0_5 = arith.constant 0 : index
      %19 = vector.load %arg5[%c0, %c0_5] : memref<128x64xbf16, #tpu.memory_space<vmem>>, vector<128x64xbf16>
      %c0_6 = arith.constant 0 : index
      %c0_7 = arith.constant 0 : index
      %20 = vector.load %arg11[%c0_6, %c0_7] : memref<64x48xbf16, #tpu.memory_space<vmem>>, vector<64x48xbf16>
      %cst = arith.constant dense<0.000000e+00> : vector<128x48xf32>
      %21 = tpu.matmul %19, %20, %cst {dimension_numbers = #tpu.dot_dimension_numbers<[1], [0], [0], [1], [0, 0, 1, 1], [], []>} : vector<128x64xbf16>, vector<64x48xbf16>, vector<128x48xf32> -> vector<128x48xf32>
      %c0_8 = arith.constant 0 : index
      %c0_9 = arith.constant 0 : index
      %22 = vector.load %arg12[%c0_8, %c0_9] : memref<1x48xf32, #tpu.memory_space<vmem>>, vector<1x48xf32>
      %23 = vector.broadcast %22 : vector<1x48xf32> to vector<128x48xf32>
      %24 = arith.addf %21, %23 : vector<128x48xf32>
      %25 = tpu.iota {dimensions = array<i32: 1>} : vector<1x48xi32>
      %c32_i32 = arith.constant 32 : i32
      %26 = vector.broadcast %c32_i32 : i32 to vector<1x48xi32>
      %27 = arith.cmpi slt, %25, %26 : vector<1x48xi32>
      %cst_10 = arith.constant 0.000000e+00 : f32
      %28 = vector.broadcast %cst_10 : f32 to vector<128x48xf32>
      %29 = arith.maximumf %24, %28 : vector<128x48xf32>
      %30 = vector.shape_cast %27 : vector<1x48xi1> to vector<1x48xi1>
      %31 = vector.broadcast %30 : vector<1x48xi1> to vector<128x48xi1>
      %32 = arith.select %31, %29, %24 : vector<128x48xi1>, vector<128x48xf32>
      %33 = vector.extract_strided_slice %32 {offsets = [0, 0], sizes = [128, 16], strides = [1, 1]} : vector<128x48xf32> to vector<128x16xf32>
      %34 = vector.extract_strided_slice %32 {offsets = [0, 16], sizes = [128, 16], strides = [1, 1]} : vector<128x48xf32> to vector<128x16xf32>
      %35 = vector.extract_strided_slice %32 {offsets = [0, 32], sizes = [128, 16], strides = [1, 1]} : vector<128x48xf32> to vector<128x16xf32>
      %36 = arith.mulf %33, %34 : vector<128x16xf32>
      %c0_11 = arith.constant 0 : index
      %c0_12 = arith.constant 0 : index
      %37 = vector.load %arg9[%c0_11, %c0_12] : memref<16x2xf32, #tpu.memory_space<vmem>>, vector<16x2xf32>
      %cst_13 = arith.constant dense<0.000000e+00> : vector<128x2xf32>
      %38 = tpu.matmul %36, %37, %cst_13 {dimension_numbers = #tpu.dot_dimension_numbers<[1], [0], [0], [1], [0, 0, 1, 1], [], []>} : vector<128x16xf32>, vector<16x2xf32>, vector<128x2xf32> -> vector<128x2xf32>
      %cst_14 = arith.constant 0.353553385 : f32
      %39 = vector.broadcast %cst_14 : f32 to vector<128x2xf32>
      %40 = arith.mulf %38, %39 : vector<128x2xf32>
      %c0_15 = arith.constant 0 : index
      %c0_16 = arith.constant 0 : index
      %41 = vector.load %arg6[%c0_15, %c0_16] : memref<128x1xi32, #tpu.memory_space<vmem>>, vector<128x1xi32>
      %42 = vector.broadcast %6 : i32 to vector<128x1xi32>
      %43 = arith.cmpi sge, %41, %42 : vector<128x1xi32>
      %c8_i32_17 = arith.constant 8 : i32
      %44 = arith.addi %6, %c8_i32_17 : i32
      %45 = vector.broadcast %44 : i32 to vector<128x1xi32>
      %46 = arith.cmpi slt, %41, %45 : vector<128x1xi32>
      %47 = arith.andi %43, %46 : vector<128x1xi1>
      %cst_18 = arith.constant -1.000000e+30 : f32
      %48 = vector.shape_cast %47 : vector<128x1xi1> to vector<128x1xi1>
      %49 = vector.broadcast %48 : vector<128x1xi1> to vector<128x2xi1>
      %50 = vector.broadcast %cst_18 : f32 to vector<128x2xf32>
      %51 = arith.select %49, %40, %50 : vector<128x2xi1>, vector<128x2xf32>
      %cst_19 = arith.constant dense<0xFF800000> : vector<2xf32>
      %52 = vector.multi_reduction <maximumf>, %51, %cst_19 [0] : vector<128x2xf32> to vector<2xf32>
      %53 = vector.shape_cast %52 : vector<2xf32> to vector<1x2xf32>
      %c0_20 = arith.constant 0 : index
      %c0_21 = arith.constant 0 : index
      %54 = vector.load %arg19[%c0_20, %c0_21] : memref<1x2xf32, #tpu.memory_space<vmem>>, vector<1x2xf32>
      %55 = arith.maximumf %54, %53 : vector<1x2xf32>
      %c0_22 = arith.constant 0 : index
      %c0_23 = arith.constant 0 : index
      %56 = vector.load %arg19[%c0_22, %c0_23] : memref<1x2xf32, #tpu.memory_space<vmem>>, vector<1x2xf32>
      %57 = arith.subf %56, %55 : vector<1x2xf32>
      %58 = math.exp %57 : vector<1x2xf32>
      %c0_24 = arith.constant 0 : index
      %c0_25 = arith.constant 0 : index
      %59 = vector.load %arg19[%c0_24, %c0_25] : memref<1x2xf32, #tpu.memory_space<vmem>>, vector<1x2xf32>
      tpu.vector_store %arg19[%c0_24, %c0_25], %55 {strides = array<i32>} : memref<1x2xf32, #tpu.memory_space<vmem>>, vector<1x2xf32>,
      %60 = vector.broadcast %55 : vector<1x2xf32> to vector<128x2xf32>
      %61 = arith.subf %51, %60 : vector<128x2xf32>
      %62 = math.exp %61 : vector<128x2xf32>
      %c0_26 = arith.constant 0 : index
      %c0_27 = arith.constant 0 : index
      %63 = vector.load %arg10[%c0_26, %c0_27] : memref<2x16xf32, #tpu.memory_space<vmem>>, vector<2x16xf32>
      %cst_28 = arith.constant dense<0.000000e+00> : vector<128x16xf32>
      %64 = tpu.matmul %62, %63, %cst_28 {dimension_numbers = #tpu.dot_dimension_numbers<[1], [0], [0], [1], [0, 0, 1, 1], [], []>} : vector<128x2xf32>, vector<2x16xf32>, vector<128x16xf32> -> vector<128x16xf32>
      %65 = arith.mulf %64, %35 : vector<128x16xf32>
      %66 = tpu.concatenate %62, %65 in 1 : vector<128x2xf32>, vector<128x16xf32> -> vector<128x18xf32>
      %67 = arith.truncf %66 : vector<128x18xf32> to vector<128x18xbf16>
      %68 = tpu.iota {dimensions = array<i32: 0>} : vector<8x128xi32>
      %69 = vector.broadcast %6 : i32 to vector<8x128xi32>
      %70 = arith.addi %68, %69 : vector<8x128xi32>
      %c0_29 = arith.constant 0 : index
      %c0_30 = arith.constant 0 : index
      %71 = vector.load %arg7[%c0_29, %c0_30] : memref<1x128xi32, #tpu.memory_space<vmem>>, vector<1x128xi32>
      %72 = vector.broadcast %71 : vector<1x128xi32> to vector<8x128xi32>
      %73 = arith.cmpi eq, %70, %72 : vector<8x128xi32>
      %74 = arith.extui %73 : vector<8x128xi1> to vector<8x128xi32>
      %75 = arith.sitofp %74 : vector<8x128xi32> to vector<8x128xf32>
      %76 = arith.truncf %75 : vector<8x128xf32> to vector<8x128xbf16>
      %cst_31 = arith.constant dense<0.000000e+00> : vector<8x18xf32>
      %77 = tpu.matmul %76, %67, %cst_31 {dimension_numbers = #tpu.dot_dimension_numbers<[1], [0], [0], [1], [0, 0, 1, 1], [], []>} : vector<8x128xbf16>, vector<128x18xbf16>, vector<8x18xf32> -> vector<8x18xf32>
      %c0_32 = arith.constant 0 : index
      %c0_33 = arith.constant 0 : index
      %78 = vector.load %arg10[%c0_32, %c0_33] : memref<2x16xf32, #tpu.memory_space<vmem>>, vector<2x16xf32>
      %cst_34 = arith.constant dense<0.000000e+00> : vector<1x16xf32>
      %79 = tpu.matmul %58, %78, %cst_34 {dimension_numbers = #tpu.dot_dimension_numbers<[1], [0], [0], [1], [0, 0, 1, 1], [], []>} : vector<1x2xf32>, vector<2x16xf32>, vector<1x16xf32> -> vector<1x16xf32>
      %c0_35 = arith.constant 0 : index
      %c0_36 = arith.constant 0 : index
      %80 = vector.load %arg20[%c0_35, %c0_36] : memref<8x2xf32, #tpu.memory_space<vmem>>, vector<8x2xf32>
      %81 = vector.broadcast %58 : vector<1x2xf32> to vector<8x2xf32>
      %82 = arith.mulf %80, %81 : vector<8x2xf32>
      %83 = vector.extract_strided_slice %77 {offsets = [0, 0], sizes = [8, 2], strides = [1, 1]} : vector<8x18xf32> to vector<8x2xf32>
      %84 = arith.addf %82, %83 : vector<8x2xf32>
      %c0_37 = arith.constant 0 : index
      %c0_38 = arith.constant 0 : index
      %85 = vector.load %arg20[%c0_37, %c0_38] : memref<8x2xf32, #tpu.memory_space<vmem>>, vector<8x2xf32>
      tpu.vector_store %arg20[%c0_37, %c0_38], %84 {strides = array<i32>} : memref<8x2xf32, #tpu.memory_space<vmem>>, vector<8x2xf32>,
      %c0_39 = arith.constant 0 : index
      %c0_40 = arith.constant 0 : index
      %86 = vector.load %arg21[%c0_39, %c0_40] : memref<8x16xf32, #tpu.memory_space<vmem>>, vector<8x16xf32>
      %87 = vector.broadcast %79 : vector<1x16xf32> to vector<8x16xf32>
      %88 = arith.mulf %86, %87 : vector<8x16xf32>
      %89 = vector.extract_strided_slice %77 {offsets = [0, 2], sizes = [8, 16], strides = [1, 1]} : vector<8x18xf32> to vector<8x16xf32>
      %90 = arith.addf %88, %89 : vector<8x16xf32>
      %c0_41 = arith.constant 0 : index
      %c0_42 = arith.constant 0 : index
      %91 = vector.load %arg21[%c0_41, %c0_42] : memref<8x16xf32, #tpu.memory_space<vmem>>, vector<8x16xf32>
      tpu.vector_store %arg21[%c0_41, %c0_42], %90 {strides = array<i32>} : memref<8x16xf32, #tpu.memory_space<vmem>>, vector<8x16xf32>,
    } else {
    }
    %c4_i32 = arith.constant 4 : i32
    %15 = arith.andi %2, %c4_i32 : i32
    %c0_i32_3 = arith.constant 0 : i32
    %16 = arith.cmpi ne, %15, %c0_i32_3 : i32
    %17 = arith.extui %16 : i1 to i32
    %c0_i32_4 = arith.constant 0 : i32
    %18 = arith.cmpi ne, %17, %c0_i32_4 : i32
    scf.if %18 {
      %c0 = arith.constant 0 : index
      %c0_5 = arith.constant 0 : index
      %19 = vector.load %arg20[%c0, %c0_5] : memref<8x2xf32, #tpu.memory_space<vmem>>, vector<8x2xf32>
      %cst = arith.constant 0.000000e+00 : f32
      %20 = vector.broadcast %cst : f32 to vector<8x2xf32>
      %21 = arith.cmpf ogt, %19, %20 : vector<8x2xf32>
      %22 = tpu.reciprocal %19 {approx = true} : vector<8x2xf32> -> vector<8x2xf32>
      %cst_6 = arith.constant 0.000000e+00 : f32
      %23 = vector.broadcast %cst_6 : f32 to vector<8x2xf32>
      %24 = arith.select %21, %22, %23 : vector<8x2xi1>, vector<8x2xf32>
      %c0_7 = arith.constant 0 : index
      %c0_8 = arith.constant 0 : index
      %25 = vector.load %arg21[%c0_7, %c0_8] : memref<8x16xf32, #tpu.memory_space<vmem>>, vector<8x16xf32>
      %c0_9 = arith.constant 0 : index
      %c0_10 = arith.constant 0 : index
      %26 = vector.load %arg10[%c0_9, %c0_10] : memref<2x16xf32, #tpu.memory_space<vmem>>, vector<2x16xf32>
      %cst_11 = arith.constant dense<0.000000e+00> : vector<8x16xf32>
      %27 = tpu.matmul %24, %26, %cst_11 {dimension_numbers = #tpu.dot_dimension_numbers<[1], [0], [0], [1], [0, 0, 1, 1], [], []>} : vector<8x2xf32>, vector<2x16xf32>, vector<8x16xf32> -> vector<8x16xf32>
      %28 = arith.mulf %25, %27 : vector<8x16xf32>
      %c0_12 = arith.constant 0 : index
      %c0_13 = arith.constant 0 : index
      %29 = vector.load %arg13[%c0_12, %c0_13] : memref<16x16xf32, #tpu.memory_space<vmem>>, vector<16x16xf32>
      %cst_14 = arith.constant dense<0.000000e+00> : vector<8x16xf32>
      %30 = tpu.matmul %28, %29, %cst_14 {dimension_numbers = #tpu.dot_dimension_numbers<[1], [0], [0], [1], [0, 0, 1, 1], [], []>} : vector<8x16xf32>, vector<16x16xf32>, vector<8x16xf32> -> vector<8x16xf32>
      %c0_15 = arith.constant 0 : index
      %c0_16 = arith.constant 0 : index
      %31 = vector.load %arg8[%c0_15, %c0_16] : memref<8x16xf32, #tpu.memory_space<vmem>>, vector<8x16xf32>
      %c0_17 = arith.constant 0 : index
      %c0_18 = arith.constant 0 : index
      %32 = vector.load %arg14[%c0_17, %c0_18] : memref<16x16xf32, #tpu.memory_space<vmem>>, vector<16x16xf32>
      %cst_19 = arith.constant dense<0.000000e+00> : vector<8x16xf32>
      %33 = tpu.matmul %31, %32, %cst_19 {dimension_numbers = #tpu.dot_dimension_numbers<[1], [0], [0], [1], [0, 0, 1, 1], [], []>} : vector<8x16xf32>, vector<16x16xf32>, vector<8x16xf32> -> vector<8x16xf32>
      %34 = arith.addf %30, %33 : vector<8x16xf32>
      %c0_20 = arith.constant 0 : index
      %c0_21 = arith.constant 0 : index
      %35 = vector.load %arg15[%c0_20, %c0_21] : memref<1x16xf32, #tpu.memory_space<vmem>>, vector<1x16xf32>
      %36 = vector.broadcast %35 : vector<1x16xf32> to vector<8x16xf32>
      %37 = arith.addf %34, %36 : vector<8x16xf32>
      %cst_22 = arith.constant 0.000000e+00 : f32
      %38 = vector.broadcast %cst_22 : f32 to vector<8x16xf32>
      %39 = arith.maximumf %37, %38 : vector<8x16xf32>
      %c0_23 = arith.constant 0 : index
      %c0_24 = arith.constant 0 : index
      %40 = vector.load %arg16[%c0_23, %c0_24] : memref<16x16xf32, #tpu.memory_space<vmem>>, vector<16x16xf32>
      %cst_25 = arith.constant dense<0.000000e+00> : vector<8x16xf32>
      %41 = tpu.matmul %39, %40, %cst_25 {dimension_numbers = #tpu.dot_dimension_numbers<[1], [0], [0], [1], [0, 0, 1, 1], [], []>} : vector<8x16xf32>, vector<16x16xf32>, vector<8x16xf32> -> vector<8x16xf32>
      %c0_26 = arith.constant 0 : index
      %c0_27 = arith.constant 0 : index
      %42 = vector.load %arg17[%c0_26, %c0_27] : memref<1x16xf32, #tpu.memory_space<vmem>>, vector<1x16xf32>
      %43 = vector.broadcast %42 : vector<1x16xf32> to vector<8x16xf32>
      %44 = arith.addf %41, %43 : vector<8x16xf32>
      %c0_28 = arith.constant 0 : index
      %c0_29 = arith.constant 0 : index
      %45 = vector.load %arg18[%c0_28, %c0_29] : memref<8x16xf32, #tpu.memory_space<vmem>>, vector<8x16xf32>
      tpu.vector_store %arg18[%c0_28, %c0_29], %44 {strides = array<i32>} : memref<8x16xf32, #tpu.memory_space<vmem>>, vector<8x16xf32>,
    } else {
    }
    return
  }
  func.func @transform_0(%arg0: i32, %arg1: i32, %arg2: memref<2x4xi32, #tpu.memory_space<smem>>, %arg3: memref<2x4xi32, #tpu.memory_space<smem>>, %arg4: memref<2x4xi32, #tpu.memory_space<smem>>) -> (i32, i32) {
    %0 = arith.index_cast %arg0 : i32 to index
    %1 = arith.index_cast %arg1 : i32 to index
    %2 = memref.load %arg3[%0, %1] : memref<2x4xi32, #tpu.memory_space<smem>>
    %c0_i32 = arith.constant 0 : i32
    %c0_i32_0 = arith.constant 0 : i32
    return %2, %c0_i32 : i32, i32
  }
  func.func @transform_1(%arg0: i32, %arg1: i32, %arg2: memref<2x4xi32, #tpu.memory_space<smem>>, %arg3: memref<2x4xi32, #tpu.memory_space<smem>>, %arg4: memref<2x4xi32, #tpu.memory_space<smem>>) -> (i32, i32) {
    %0 = arith.index_cast %arg0 : i32 to index
    %1 = arith.index_cast %arg1 : i32 to index
    %2 = memref.load %arg3[%0, %1] : memref<2x4xi32, #tpu.memory_space<smem>>
    %c0_i32 = arith.constant 0 : i32
    %c0_i32_0 = arith.constant 0 : i32
    return %2, %c0_i32 : i32, i32
  }
  func.func @transform_2(%arg0: i32, %arg1: i32, %arg2: memref<2x4xi32, #tpu.memory_space<smem>>, %arg3: memref<2x4xi32, #tpu.memory_space<smem>>, %arg4: memref<2x4xi32, #tpu.memory_space<smem>>) -> (i32, i32) {
    %0 = arith.index_cast %arg0 : i32 to index
    %1 = arith.index_cast %arg1 : i32 to index
    %2 = memref.load %arg3[%0, %1] : memref<2x4xi32, #tpu.memory_space<smem>>
    %c0_i32 = arith.constant 0 : i32
    %c0_i32_0 = arith.constant 0 : i32
    return %c0_i32, %2 : i32, i32
  }
  func.func @transform_3(%arg0: i32, %arg1: i32, %arg2: memref<2x4xi32, #tpu.memory_space<smem>>, %arg3: memref<2x4xi32, #tpu.memory_space<smem>>, %arg4: memref<2x4xi32, #tpu.memory_space<smem>>) -> (i32, i32) {
    %0 = arith.index_cast %arg0 : i32 to index
    %1 = arith.index_cast %arg1 : i32 to index
    %2 = memref.load %arg2[%0, %1] : memref<2x4xi32, #tpu.memory_space<smem>>
    %c0_i32 = arith.constant 0 : i32
    %c0_i32_0 = arith.constant 0 : i32
    return %2, %c0_i32 : i32, i32
  }
  func.func @transform_4(%arg0: i32, %arg1: i32, %arg2: memref<2x4xi32, #tpu.memory_space<smem>>, %arg3: memref<2x4xi32, #tpu.memory_space<smem>>, %arg4: memref<2x4xi32, #tpu.memory_space<smem>>) -> (i32, i32) {
    %c0_i32 = arith.constant 0 : i32
    %c0_i32_0 = arith.constant 0 : i32
    %c0_i32_1 = arith.constant 0 : i32
    return %c0_i32, %c0_i32_0 : i32, i32
  }
  func.func @transform_5(%arg0: i32, %arg1: i32, %arg2: memref<2x4xi32, #tpu.memory_space<smem>>, %arg3: memref<2x4xi32, #tpu.memory_space<smem>>, %arg4: memref<2x4xi32, #tpu.memory_space<smem>>) -> (i32, i32) {
    %c0_i32 = arith.constant 0 : i32
    %c0_i32_0 = arith.constant 0 : i32
    %c0_i32_1 = arith.constant 0 : i32
    return %c0_i32, %c0_i32_0 : i32, i32
  }
  func.func @transform_6(%arg0: i32, %arg1: i32, %arg2: memref<2x4xi32, #tpu.memory_space<smem>>, %arg3: memref<2x4xi32, #tpu.memory_space<smem>>, %arg4: memref<2x4xi32, #tpu.memory_space<smem>>) -> (i32, i32) {
    %c0_i32 = arith.constant 0 : i32
    %c0_i32_0 = arith.constant 0 : i32
    %c0_i32_1 = arith.constant 0 : i32
    return %c0_i32, %c0_i32_0 : i32, i32
  }
  func.func @transform_7(%arg0: i32, %arg1: i32, %arg2: memref<2x4xi32, #tpu.memory_space<smem>>, %arg3: memref<2x4xi32, #tpu.memory_space<smem>>, %arg4: memref<2x4xi32, #tpu.memory_space<smem>>) -> (i32, i32) {
    %c0_i32 = arith.constant 0 : i32
    %c0_i32_0 = arith.constant 0 : i32
    %c0_i32_1 = arith.constant 0 : i32
    return %c0_i32, %c0_i32_0 : i32, i32
  }
  func.func @transform_8(%arg0: i32, %arg1: i32, %arg2: memref<2x4xi32, #tpu.memory_space<smem>>, %arg3: memref<2x4xi32, #tpu.memory_space<smem>>, %arg4: memref<2x4xi32, #tpu.memory_space<smem>>) -> (i32, i32) {
    %c0_i32 = arith.constant 0 : i32
    %c0_i32_0 = arith.constant 0 : i32
    %c0_i32_1 = arith.constant 0 : i32
    return %c0_i32, %c0_i32_0 : i32, i32
  }
  func.func @transform_9(%arg0: i32, %arg1: i32, %arg2: memref<2x4xi32, #tpu.memory_space<smem>>, %arg3: memref<2x4xi32, #tpu.memory_space<smem>>, %arg4: memref<2x4xi32, #tpu.memory_space<smem>>) -> (i32, i32) {
    %c0_i32 = arith.constant 0 : i32
    %c0_i32_0 = arith.constant 0 : i32
    %c0_i32_1 = arith.constant 0 : i32
    return %c0_i32, %c0_i32_0 : i32, i32
  }
  func.func @transform_10(%arg0: i32, %arg1: i32, %arg2: memref<2x4xi32, #tpu.memory_space<smem>>, %arg3: memref<2x4xi32, #tpu.memory_space<smem>>, %arg4: memref<2x4xi32, #tpu.memory_space<smem>>) -> (i32, i32) {
    %c0_i32 = arith.constant 0 : i32
    %c0_i32_0 = arith.constant 0 : i32
    %c0_i32_1 = arith.constant 0 : i32
    return %c0_i32, %c0_i32_0 : i32, i32
  }
  func.func @transform_11(%arg0: i32, %arg1: i32, %arg2: memref<2x4xi32, #tpu.memory_space<smem>>, %arg3: memref<2x4xi32, #tpu.memory_space<smem>>, %arg4: memref<2x4xi32, #tpu.memory_space<smem>>) -> (i32, i32) {
    %c0_i32 = arith.constant 0 : i32
    %c0_i32_0 = arith.constant 0 : i32
    %c0_i32_1 = arith.constant 0 : i32
    return %c0_i32, %c0_i32_0 : i32, i32
  }
  func.func @transform_12(%arg0: i32, %arg1: i32, %arg2: memref<2x4xi32, #tpu.memory_space<smem>>, %arg3: memref<2x4xi32, #tpu.memory_space<smem>>, %arg4: memref<2x4xi32, #tpu.memory_space<smem>>) -> (i32, i32) {
    %c0_i32 = arith.constant 0 : i32
    %c0_i32_0 = arith.constant 0 : i32
    %c0_i32_1 = arith.constant 0 : i32
    return %c0_i32, %c0_i32_0 : i32, i32
  }
  func.func @transform_13(%arg0: i32, %arg1: i32, %arg2: memref<2x4xi32, #tpu.memory_space<smem>>, %arg3: memref<2x4xi32, #tpu.memory_space<smem>>, %arg4: memref<2x4xi32, #tpu.memory_space<smem>>) -> (i32, i32) {
    %0 = arith.index_cast %arg0 : i32 to index
    %1 = arith.index_cast %arg1 : i32 to index
    %2 = memref.load %arg2[%0, %1] : memref<2x4xi32, #tpu.memory_space<smem>>
    %c0_i32 = arith.constant 0 : i32
    %c0_i32_0 = arith.constant 0 : i32
    return %2, %c0_i32 : i32, i32
  }
}

</mosaic_0001>

<bundles_post_ra>
// kernel: custom-call.4
= control target key start
LH: loop header
LB: loop body
LE: loop exit
PB: predicated region body
PF: predicated region fallthrough
CT: control target
= control target key end

     0   :  { %s6_s0 = inlined_call_operand.vmem [shape: u32[4], index: 0, kind: output, shape index: {}]  }

// kernel: temporal_attention_forward.1
= control target key start
LH: loop header
LB: loop body
LE: loop exit
PB: predicated region body
PF: predicated region fallthrough
CT: control target
= control target key end

     0   :  { %s2432_s27 = smov [#allocation6]   ;;  %s2433_s28 = smov [#allocation7]   ;;  %s3178_s0 = inlined_call_operand.vmem [shape: s32[2,4], index: 0, kind: input, shape index: {}]   ;;  %s3179_s3 = inlined_call_operand.vmem [shape: bf16[256,64], index: 3, kind: input, shape index: {}]   ;;  %s3180_s4 = inlined_call_operand.vmem [shape: s32[256,1], index: 4, kind: input, shape index: {}]   ;;  %s3181_s5 = inlined_call_operand.vmem [shape: s32[1,256], index: 5, kind: input, shape index: {}]   ;;  %s3182_s6 = inlined_call_operand.vmem [shape: f32[24,16], index: 6, kind: input, shape index: {}]   ;;  %s3183_s7 = inlined_call_operand.vmem [shape: f32[16,2], index: 7, kind: input, shape index: {}]   ;;  %s3184_s8 = inlined_call_operand.vmem [shape: f32[2,16], index: 8, kind: input, shape index: {}]   ;;  %s3185_s9 = inlined_call_operand.vmem [shape: bf16[64,48], index: 9, kind: input, shape index: {}]   ;;  %s3186_s10 = inlined_call_operand.vmem [shape: f32[1,48], index: 10, kind: input, shape index: {}]   ;;  %s3187_s11 = inlined_call_operand.vmem [shape: f32[16,16], index: 11, kind: input, shape index: {}]   ;;  %s3188_s12 = inlined_call_operand.vmem [shape: f32[16,16], index: 12, kind: input, shape index: {}]   ;;  %s3189_s13 = inlined_call_operand.vmem [shape: f32[1,16], index: 13, kind: input, shape index: {}]   ;;  %s3190_s14 = inlined_call_operand.vmem [shape: f32[16,16], index: 14, kind: input, shape index: {}]   ;;  %s3191_s15 = inlined_call_operand.vmem [shape: f32[1,16], index: 15, kind: input, shape index: {}]   ;;  %s3192_s16 = inlined_call_operand.vmem [shape: f32[24,16], index: 16, kind: output, shape index: {}]   ;;  %s3193_s1 = inlined_call_operand.vmem [shape: s32[2,4], index: 1, kind: input, shape index: {}]   ;;  %s3194_s2 = inlined_call_operand.vmem [shape: s32[2,4], index: 2, kind: input, shape index: {}]  }
   0x1   :  { %3199 = sst [smem:[#allocation15_spill]] %s3178_s0  ;;  %s27_s26 = sshll.u32 %s3193_s1, 4  ;;  %s28_s26 = int_to_ptr.vmem [resolvable:$true] %s27_s26 }
   0x2   :  { %3200 = sst [smem:[#allocation16_spill]] %s3179_s3  ;;  %s32_s0 = sshll.u32 %s3194_s2, 4  ;;  %s33_s0 = int_to_ptr.vmem [resolvable:$true] %s32_s0 }
   0x3   :  { %3201 = sst [smem:[#allocation17_spill]] %s3188_s12  ;;  %s2434_s17 = smov [#allocation8]  }
   0x4   :  { %3202 = sst [smem:[#allocation18_spill]] %s3191_s15 }
   0x5   :  { %s3203_s23 = sld [smem:[#allocation15_spill]] }
   0xb   :  { %s22_s12 = sshll.u32 %s3203_s23, 4  ;;  %s23_s12 = int_to_ptr.vmem [resolvable:$true] %s22_s12 }
   0xc   :  { %25 = dma.vmem_to_smem %s23_s12, 32, %s2432_s27, [#allocation5] }
   0xd   :  { %30 = dma.vmem_to_smem %s28_s26, 32, %s2433_s28, [#allocation5] }
   0xe   :  { %35 = dma.vmem_to_smem %s33_s0, 32, %s2434_s17, [#allocation5] }
   0xf   :  { %2410 = dma.done.wait [#allocation5], 96 }
  0x10   :  { %2411 = vsyncadd [#allocation5], 4294967200 }
  0x11   :  { %38 = sfence }
  0x12   :  { %s2537_s18 = smov 0   ;;  %s2539_s19 = smov 0  }
  0x13   :  { %s2541_s1 = smov 0   ;;  %s2543_s20 = smov 0  }
  0x14   :  { %s2545_s12 = smov 0  }
  0x15 LB: > { %3204 = sst [smem:[#allocation10_spill]] %s2422_s1  ;;  %s53_s2 = sadd.s32 1, %s2422_s1  ;;  %s2430_s12 = sphi %s2545_s12, %s44_s12   ;;  %s2426_s20 = sphi %s2543_s20, %s3216_s20   ;;  %s2422_s1 = sphi %s2541_s1, %s3215_s1   ;;  %s2418_s19 = sphi %s2539_s19, %s3214_s19   ;;  %s2414_s18 = sphi %s2537_s18, %s3213_s18  }
  0x16   : > { %3205 = sst [smem:[#allocation11_spill]] %s2426_s20  ;;  %s56_s21 = sadd.s32 1, %s2426_s20 }
  0x17   : > { %3206 = sst [smem:[#allocation12_spill]] %s2430_s12  ;;  %p54_p0 = scmp.ge.s32.totalorder %s53_s2, 4 }
  0x18   : > { %p2086_p1 = scmp.ge.s32.totalorder %s2430_s12, 1  ;;  %p593_p2 = scmp.lt.s32.totalorder %s2430_s12, 9 }
  0x19   : > { %s3218_s2 = smov (%p54_p0, %s53_s2), 0  ;;  %s3220_s21 = smov (!%p54_p0, %s56_s21), %s2426_s20 }
  0x1a   : > { %3207 = sst [smem:[#allocation13_spill]] %s3218_s2  ;;  %p594_p3 = pnand %p2086_p1, %p593_p2 }
  0x1b   : > { %p58_p4 = scmp.ge.s32.totalorder %s3220_s21, 2  ;;  %s688_s22 = sshra.s32 (!%p594_p3), %s2414_s18, 7 }
  0x1c   : > { %597 = sbr.rel (%p594_p3) target bundleno = 1691 (0x69b), region = 72  ;;  %s693_s23 = sand.u32 (!%p594_p3), 127, %s2414_s18 }
  0x1d   : > { %s3222_s21 = smov (%p58_p4, %s3220_s21), 0  ;;  %s690_s24 = sadd.s32 (!%p594_p3), %s2418_s19, %s688_s22 }
  0x1e   : > { %3208 = sst [smem:[#allocation14_spill]] %s3222_s21  ;;  %s2087_s25 = sshll.u32 (!%p594_p3), %s690_s24, 7 }
  0x1f   : > { %s694_s26 = sadd.s32 (!%p594_p3), %s2087_s25, %s693_s23  ;;  %s3209_s3 = sld [smem:[#allocation16_spill]] (!%p594_p3) }
  0x20   : > { %s695_s27 = sld [smem:[#allocation7 + %s694_s26]] (!%p594_p3) }
  0x21   : > { %s717_s28 = sld [smem:[#allocation7 + %s694_s26]] }
  0x22   : > { %s739_s29 = sld [smem:[#allocation7 + %s694_s26]] }
  0x23   : > { %s758_s30 = sld [smem:[#allocation6 + %s694_s26]] }
  0x24   : > { %s778_s0 = sld [smem:[#allocation6 + %s694_s26]] }
  0x25   : > { %s2567_s17 = sld [smem:[#allocation8 + %s694_s26]] }
  0x26   : > { %s2088_s1 = sshll.u32 %s695_s27, 4  ;;  %s2569_s2 = sld [smem:[#allocation6 + %s694_s26]] }
  0x27   : > { %p697_p5 = scmp.lt.s32.totalorder %s2088_s1, 31  ;;  %s2091_s20 = sshll.u32 %s717_s28, 4 }
  0x28   : > { %p719_p6 = scmp.lt.s32.totalorder %s2091_s20, 31  ;;  %p740_p7 = scmp.lt.s32.totalorder %s739_s29, 1 }
  0x29   : > { %s3224_s1 = smov (!%p697_p5, %s2088_s1), 31  ;;  %p759_p8 = scmp.lt.s32.totalorder %s758_s30, 2 }
  0x2a   : > { %s3226_s20 = smov (!%p719_p6, %s2091_s20), 31  ;;  %s2089_s18 = sshll.u32 %s3224_s1, 2 }
  0x2b   : > { %s2574_s23 = scalar_lea.vmem %s3209_s3, %s2089_s18  ;;  %s2092_s24 = sshll.u32 %s3226_s20, 3 }
  0x2c   : > { %s2579_s26 = scalar_lea.vmem %s3180_s4, %s2092_s24  ;;  %p779_p9 = scmp.lt.s32.totalorder %s778_s0, 2 }
  0x2d   : > { %s3228_s29 = smov (!%p740_p7, %s739_s29), 1  ;;  %s3230_s30 = smov (!%p759_p8, %s758_s30), 2 }
  0x2e   : > { %s742_s1 = scalar_lea.vmem %s3181_s5, %s3228_s29  ;;  %s2099_s12 = sshll.u32 %s2569_s2, 3 }
  0x2f   : > { %s2095_s15 = sshll.u32 %s3230_s30, 3  ;;  %s802_s19 = sand.u32 1, %s2567_s17 }
  0x30   : > { %s2592_s20 = scalar_lea.vmem %s3182_s6, %s2095_s15  ;;  %s3232_s0 = smov (!%p779_p9, %s778_s0), 2 }
  0x31   : > { %s2097_s24 = sshll.u32 %s3232_s0, 3  ;;  %p2100_p10 = scmp.eq.s32.totalorder %s802_s19, 0 }
  0x32   : > { %s2597_s3 = scalar_lea.vmem %s3192_s16, %s2097_s24 }
  0x33   : > { %806 = sbr.rel (%p2100_p10) target bundleno = 60 (0x3c), region = 76 }
  0x38   : > { %vm807_vm0 = vcmask 8192   ;;  %vm809_vm1 = vcmask 15360   ;;  %v2435_v0 = vmov -1e+30   ;;  %vm811_vm2 = vcmask 130048  }
  0x39   : > { %808 = vst.msk [vmem:[#allocation2] sm:$0x1] %vm807_vm0, %v2435_v0  ;;  %v2436_v1 = vmov 0.0  }
  0x3a   : > { %810 = vst.msk [vmem:[#allocation3] sm:$0xff] %vm809_vm1, %v2436_v1 }
  0x3b   : > { %812 = vst.msk [vmem:[#allocation4] sm:$0xff] %vm811_vm2, %v2436_v1 }
  0x3c PF: > { %s813_s15 = sand.u32 2, %s2567_s17 }
  0x3d   : > { %p2101_p11 = scmp.eq.s32.totalorder %s813_s15, 0 }
  0x3e   : > { %s1266_s15 = sadd.s32 (!%p2101_p11), 8, %s2099_s12  ;;  %s2440_s19 = smov (!%p2101_p11), 2  }
  0x3f   : > { %817 = sbr.rel (%p2101_p11) target bundleno = 1272 (0x4f8), region = 80  ;;  %s2442_s29 = smov (!%p2101_p11), 126  }
  0x44   : > { %v2215_v2 = vld [vmem:[%s3185_s9 + $0x18] sm:$0xff]  ;;  %v2214_v3 = vld [vmem:[%s3185_s9 + $0x10] sm:$0xff]  ;;  %v2213_v4 = vld [vmem:[%s3185_s9 + $0x8] sm:$0xff]  ;;  %vm910_vm3 = vcmask 523264   ;;  %v984_v14 = vlaneseq  ;;  %v2438_v52 = vmov 0  }
  0x45   : > { %939 = vmatpush.bf16.msra.mxu0 %v2215_v2  ;;  %2216 = vmatpush.bf16.msra.mxu3 %v2215_v2  ;;  %v2212_v5 = vld [vmem:[%s3185_s9] sm:$0xff]  ;;  %v2205_v7 = vld [vmem:[%s2574_s23 + $0x8] sm:$0xff]  ;;  %v2210_v8 = vld [vmem:[%s2574_s23 + $0x30] sm:$0xff] }
  0x46   : > { %v2204_v6 = vld [vmem:[%s2574_s23] sm:$0xff]  ;;  %v2206_v9 = vld [vmem:[%s2574_s23 + $0x10] sm:$0xff]  ;;  %v2211_v10 = vld [vmem:[%s2574_s23 + $0x38] sm:$0xff]  ;;  %v2634_v16 = vand.u32 127, %v984_v14  ;;  %2273 = vset.pattern.permute.xlu0 %v2438_v52  ;;  %2271 = vset.pattern.permute.xlu1 %v2438_v52 }
  0x47   : > { %v2207_v11 = vld [vmem:[%s2574_s23 + $0x18] sm:$0xff]  ;;  %v2208_v12 = vld [vmem:[%s2574_s23 + $0x20] sm:$0xff]  ;;  %v2209_v13 = vld [vmem:[%s2574_s23 + $0x28] sm:$0xff]  ;;  %s2437_s23 = smov 112   ;;  %2272 = vset.pattern.permute.xlu2 %v2438_v52 }
  0x48   : > { %v2631_v15 = vld [vmem:[%s3186_s10] ss:$0 sm:$0xff]  ;;  %vm986_vm4 = vcmp.lt.s32.totalorder %v2634_v16, 32 }
  0x49   : > { %940 = vmatpush.bf16.msra.mxu0 %v2214_v3  ;;  %2217 = vmatpush.bf16.msra.mxu3 %v2214_v3  ;;  %v1237_v16 = vld [vmem:[%s2579_s26 + $0x20] sm:$0xff] }
  0x4d   : > { %941 = vmatpush.bf16.msra.mxu0 %v2213_v4  ;;  %2218 = vmatpush.bf16.msra.mxu3 %v2213_v4 }
  0x51   : > { %942 = vmatpush.bf16.msra.mxu0 %v2212_v5  ;;  %2219 = vmatpush.bf16.msra.mxu3 %v2212_v5 }
  0x54   : > { %2150 = vmatmul.msk.bf16.vlgmr.msra.gmra.mxu0 %vm910_vm3, %v2204_v6  ;;  %2156 = vmatmul.msk.bf16.vlgmr.msra.gmra.mxu3 %vm910_vm3, %v2210_v8  ;;  %v1102_v8 = vld [vmem:[%s3183_s7 + $0x8] sm:$0xff] }
  0x55   : > { %1166 = vmatpush.msra.mxu1 %v1102_v8 }
  0x64   : > { %2151 = vmatmul.msk.bf16.gmra.mxu0 %vm910_vm3, %v2205_v7  ;;  %2157 = vmatmul.msk.bf16.gmra.mxu3 %vm910_vm3, %v2211_v10 }
  0x74   : > { %2152 = vmatmul.msk.bf16.gmra.mxu0 %vm910_vm3, %v2206_v9 }
  0x84   : > { %2153 = vmatmul.msk.bf16.gmra.mxu0 %vm910_vm3, %v2207_v11 }
  0x94   : > { %2154 = vmatmul.msk.bf16.gmra.mxu0 %vm910_vm3, %v2208_v12  ;;  %v1101_v12 = vld [vmem:[%s3183_s7] sm:$0xff] }
  0x95   : > { %1167 = vmatpush.msra.mxu1 %v1101_v12 }
  0xa4   : > { %2155 = vmatmul.msk.bf16.gmra.mxu0 %vm910_vm3, %v2209_v13  ;;  %v1233_v13 = vld [vmem:[%s2579_s26] sm:$0xff] }
  0xd1   : > { %v944_v17 = vpop.f32.mrf.mxu0 }
  0xd2   : > { %v945_v18 = vadd.f32 %v2631_v15, %v944_v17  ;;  %v2738_v17 = vstv %s2099_s12  ;;  %s2439_s12 = smov 96  }
  0xd3   : > { %vm1250_vm5 = vcmp.ge.s32.totalorder %v1233_v13, %v2738_v17 }
  0xd4   : > { %v987_v19 = vmax.f32 %v945_v18, 0.0 }
  0xd6   : > { %v2640_v20 = vsel %vm986_vm4, %v987_v19, %v945_v18  ;;  %v2740_v18 = vstv %s1266_s15 }
  0xd7   : > { %1037 = vrot.lane.b32.xlu0 %v2640_v20, %s2437_s23  ;;  %v974_v44 = vpop.f32.mrf.mxu3  ;;  %vm1268_vm6 = vcmp.lt.s32.totalorder %v1233_v13, %v2740_v18 }
  0xd8   : > { %v975_v59 = vadd.f32 %v2631_v15, %v974_v44  ;;  %vm1284_vm9 = vmand %vm1250_vm5, %vm1268_vm6  ;;  %vm1272_vm5 = vcmp.lt.s32.totalorder %v1237_v16, %v2740_v18 }
  0xd9   : > { %v946_v21 = vpop.f32.mrf.mxu0 }
  0xda   : > { %v947_v22 = vadd.f32 %v2631_v15, %v946_v21  ;;  %v999_v62 = vmax.f32 %v975_v59, 0.0 }
  0xdc   : > { %v988_v23 = vmax.f32 %v947_v22, 0.0  ;;  %v2715_v4 = vsel %vm986_vm4, %v999_v62, %v975_v59  ;;  %v1245_v62 = vld [vmem:[%s2579_s26 + $0x60] sm:$0xff] }
  0xde   : > { %v2647_v24 = vsel %vm986_vm4, %v988_v23, %v947_v22  ;;  %v1235_v23 = vld [vmem:[%s2579_s26 + $0x10] sm:$0xff] }
  0xdf   : > { %1039 = vrot.lane.b32.xlu0 %v2647_v24, %s2437_s23  ;;  %v976_v50 = vpop.f32.mrf.mxu3  ;;  %vm1252_vm7 = vcmp.ge.s32.totalorder %v1235_v23, %v2738_v17  ;;  %vm1270_vm8 = vcmp.lt.s32.totalorder %v1235_v23, %v2740_v18 }
  0xe0   : > { %v977_v2 = vadd.f32 %v2631_v15, %v976_v50  ;;  %vm1286_vm10 = vmand %vm1252_vm7, %vm1270_vm8 }
  0xe1   : > { %v949_v25 = vpop.f32.mrf.mxu0 }
  0xe2   : > { %v950_v26 = vadd.f32 %v2631_v15, %v949_v25  ;;  %v1000_v7 = vmax.f32 %v977_v2, 0.0 }
  0xe4   : > { %v989_v27 = vmax.f32 %v950_v26, 0.0  ;;  %v2745_v22 = vsel %vm986_vm4, %v1000_v7, %v977_v2 }
  0xe6   : > { %v2654_v28 = vsel %vm986_vm4, %v989_v27, %v950_v26  ;;  %v1234_v27 = vld [vmem:[%s2579_s26 + $0x8] sm:$0xff] }
  0xe7   : > { %1041 = vrot.lane.b32.xlu1 %v2654_v28, %s2437_s23  ;;  %v979_v56 = vpop.f32.mrf.mxu3  ;;  %vm1251_vm11 = vcmp.ge.s32.totalorder %v1234_v27, %v2738_v17  ;;  %vm1269_vm12 = vcmp.lt.s32.totalorder %v1234_v27, %v2740_v18 }
  0xe8   : > { %v980_v19 = vadd.f32 %v2631_v15, %v979_v56  ;;  %vm1285_vm1 = vmand %vm1251_vm11, %vm1269_vm12 }
  0xe9   : > { %v951_v29 = vpop.f32.mrf.mxu0 }
  0xea   : > { %v952_v30 = vadd.f32 %v2631_v15, %v951_v29  ;;  %v1236_v29 = vld [vmem:[%s2579_s26 + $0x18] sm:$0xff] }
  0xeb   : > { %vm1253_vm13 = vcmp.ge.s32.totalorder %v1236_v29, %v2738_v17  ;;  %vm1271_vm14 = vcmp.lt.s32.totalorder %v1236_v29, %v2740_v18 }
  0xec   : > { %v990_v31 = vmax.f32 %v952_v30, 0.0  ;;  %vm1287_vm2 = vmand %vm1253_vm13, %vm1271_vm14 }
  0xee   : > { %v2661_v32 = vsel %vm986_vm4, %v990_v31, %v952_v30  ;;  %v1300_v31 = vsel %vm1284_vm9, 1, %v2438_v52 }
  0xef   : > { %1043 = vrot.lane.b32.xlu1 %v2661_v32, %s2437_s23  ;;  %v981_v1 = vpop.f32.mrf.mxu3 }
  0xf0   : > { %v982_v5 = vadd.f32 %v2631_v15, %v981_v1 }
  0xf1   : > { %v954_v33 = vpop.f32.mrf.mxu0 }
  0xf2   : > { %v955_v34 = vadd.f32 %v2631_v15, %v954_v33  ;;  %v1002_v10 = vmax.f32 %v982_v5, 0.0  ;;  %v1240_v33 = vld [vmem:[%s2579_s26 + $0x38] sm:$0xff] }
  0xf3   : > { %vm1257_vm15 = vcmp.ge.s32.totalorder %v1240_v33, %v2738_v17  ;;  %vm1275_vm0 = vcmp.lt.s32.totalorder %v1240_v33, %v2740_v18 }
  0xf4   : > { %v991_v35 = vmax.f32 %v955_v34, 0.0  ;;  %v2750_v25 = vsel %vm986_vm4, %v1002_v10, %v982_v5  ;;  %vm1291_vm3 = vmand %vm1257_vm15, %vm1275_vm0  ;;  %v1248_v5 = vld [vmem:[%s2579_s26 + $0x78] sm:$0xff] }
  0xf6   : > { %v2668_v36 = vsel %vm986_vm4, %v991_v35, %v955_v34  ;;  %v1302_v34 = vsel %vm1286_vm10, 1, %v2438_v52  ;;  %v1238_v35 = vld [vmem:[%s2579_s26 + $0x28] sm:$0xff] }
  0xf7   : > { %1045 = vrot.lane.b32.xlu2 %v2668_v36, %s2437_s23  ;;  %vm1255_vm6 = vcmp.ge.s32.totalorder %v1238_v35, %v2738_v17  ;;  %vm1273_vm7 = vcmp.lt.s32.totalorder %v1238_v35, %v2740_v18 }
  0xf8   : > { %vm1289_vm11 = vmand %vm1255_vm6, %vm1273_vm7 }
  0xf9   : > { %v956_v37 = vpop.f32.mrf.mxu0 }
  0xfa   : > { %v957_v38 = vadd.f32 %v2631_v15, %v956_v37  ;;  %v1301_v37 = vsel %vm1285_vm1, 1, %v2438_v52 }
  0xfc   : > { %v992_v39 = vmax.f32 %v957_v38, 0.0 }
  0xfe   : > { %v2675_v40 = vsel %vm986_vm4, %v992_v39, %v957_v38  ;;  %v1303_v38 = vsel %vm1287_vm2, 1, %v2438_v52  ;;  %v1243_v39 = vld [vmem:[%s2579_s26 + $0x50] sm:$0xff] }
  0xff   : > { %1047 = vrot.lane.b32.xlu2 %v2675_v40, %s2437_s23  ;;  %vm1260_vm8 = vcmp.ge.s32.totalorder %v1243_v39, %v2738_v17  ;;  %vm1278_vm9 = vcmp.lt.s32.totalorder %v1243_v39, %v2740_v18 }
 0x100   : > { %vm1294_vm12 = vmand %vm1260_vm8, %vm1278_vm9 }
 0x101   : > { %v959_v41 = vpop.f32.mrf.mxu0 }
 0x102   : > { %v960_v42 = vadd.f32 %v2631_v15, %v959_v41  ;;  %v1307_v41 = vsel %vm1291_vm3, 1, %v2438_v52 }
 0x104   : > { %v993_v43 = vmax.f32 %v960_v42, 0.0 }
 0x106   : > { %v2682_v45 = vsel %vm986_vm4, %v993_v43, %v960_v42  ;;  %v1239_v42 = vld [vmem:[%s2579_s26 + $0x30] sm:$0xff]  ;;  %v1241_v43 = vld [vmem:[%s2579_s26 + $0x40] sm:$0xff] }
 0x107   : > { %1049 = vrot.lane.b32.xlu0 %v2682_v45, %s2437_s23  ;;  %vm1256_vm13 = vcmp.ge.s32.totalorder %v1239_v42, %v2738_v17  ;;  %vm1274_vm14 = vcmp.lt.s32.totalorder %v1239_v42, %v2740_v18  ;;  %vm1258_vm15 = vcmp.ge.s32.totalorder %v1241_v43, %v2738_v17  ;;  %vm1276_vm0 = vcmp.lt.s32.totalorder %v1241_v43, %v2740_v18 }
 0x108   : > { %vm1290_vm3 = vmand %vm1256_vm13, %vm1274_vm14  ;;  %vm1262_vm13 = vcmp.ge.s32.totalorder %v1245_v62, %v2738_v17  ;;  %vm1280_vm14 = vcmp.lt.s32.totalorder %v1245_v62, %v2740_v18 }
 0x109   : > { %v961_v46 = vpop.f32.mrf.mxu0  ;;  %v1306_v56 = vsel %vm1290_vm3, 1, %v2438_v52  ;;  %vm1265_vm3 = vcmp.ge.s32.totalorder %v1248_v5, %v2738_v17 }
 0x10a   : > { %v962_v47 = vadd.f32 %v2631_v15, %v961_v46  ;;  %v1305_v46 = vsel %vm1289_vm11, 1, %v2438_v52 }
 0x10c   : > { %v994_v48 = vmax.f32 %v962_v47, 0.0 }
 0x10e   : > { %v2689_v49 = vsel %vm986_vm4, %v994_v48, %v962_v47  ;;  %v1246_v47 = vld [vmem:[%s2579_s26 + $0x68] sm:$0xff]  ;;  %v1310_v48 = vsel %vm1294_vm12, 1, %v2438_v52 }
 0x10f   : > { %1051 = vrot.lane.b32.xlu1 %v2689_v49, %s2437_s23  ;;  %vm1263_vm1 = vcmp.ge.s32.totalorder %v1246_v47, %v2738_v17  ;;  %vm1281_vm2 = vcmp.lt.s32.totalorder %v1246_v47, %v2740_v18 }
 0x110   : > { %vm1297_vm6 = vmand %vm1263_vm1, %vm1281_vm2 }
 0x111   : > { %v964_v51 = vpop.f32.mrf.mxu0  ;;  %vm1296_vm1 = vmand %vm1262_vm13, %vm1280_vm14 }
 0x112   : > { %v965_v53 = vadd.f32 %v2631_v15, %v964_v51  ;;  %v1312_v7 = vsel %vm1296_vm1, 1, %v2438_v52 }
 0x114   : > { %v995_v54 = vmax.f32 %v965_v53, 0.0 }
 0x116   : > { %v2699_v55 = vsel %vm986_vm4, %v995_v54, %v965_v53  ;;  %v1242_v53 = vld [vmem:[%s2579_s26 + $0x48] sm:$0xff]  ;;  %v1244_v54 = vld [vmem:[%s2579_s26 + $0x58] sm:$0xff] }
 0x117   : > { %1053 = vrot.lane.b32.xlu2 %v2699_v55, %s2437_s23  ;;  %vm1259_vm7 = vcmp.ge.s32.totalorder %v1242_v53, %v2738_v17  ;;  %vm1277_vm8 = vcmp.lt.s32.totalorder %v1242_v53, %v2740_v18  ;;  %vm1261_vm9 = vcmp.ge.s32.totalorder %v1244_v54, %v2738_v17 }
 0x118   : > { %vm1293_vm11 = vmand %vm1259_vm7, %vm1277_vm8 }
 0x119   : > { %v966_v57 = vpop.f32.mrf.mxu0 }
 0x11a   : > { %v967_v58 = vadd.f32 %v2631_v15, %v966_v57 }
 0x11c   : > { %v996_v60 = vmax.f32 %v967_v58, 0.0 }
 0x11e   : > { %v2707_v61 = vsel %vm986_vm4, %v996_v60, %v967_v58  ;;  %v1313_v58 = vsel %vm1297_vm6, 1, %v2438_v52 }
 0x11f   : > { %1055 = vrot.lane.b32.xlu0 %v2707_v61, %s2437_s23 }
 0x121   : > { %v969_v63 = vpop.f32.mrf.mxu0 }
 0x122   : > { %v970_v0 = vadd.f32 %v2631_v15, %v969_v63  ;;  %v1247_v63 = vld [vmem:[%s2579_s26 + $0x70] sm:$0xff] }
 0x124   : > { %v997_v3 = vmax.f32 %v970_v0, 0.0 }
 0x126   : > { %v2720_v6 = vsel %vm986_vm4, %v997_v3, %v970_v0  ;;  %v1309_v0 = vsel %vm1293_vm11, 1, %v2438_v52 }
 0x127   : > { %1057 = vrot.lane.b32.xlu1 %v2720_v6, %s2437_s23  ;;  %1061 = vrot.lane.b32.xlu0 %v2715_v4, %s2437_s23 }
 0x129   : > { %v971_v9 = vpop.f32.mrf.mxu0 }
 0x12a   : > { %v972_v11 = vadd.f32 %v2631_v15, %v971_v9  ;;  %v1001_v15 = vmax.f32 %v980_v19, 0.0 }
 0x12c   : > { %v998_v21 = vmax.f32 %v972_v11, 0.0  ;;  %v2770_v30 = vsel %vm986_vm4, %v1001_v15, %v980_v19 }
 0x12e   : > { %v2754_v26 = vsel %vm986_vm4, %v998_v21, %v972_v11  ;;  %vm1254_vm4 = vcmp.ge.s32.totalorder %v1237_v16, %v2738_v17 }
 0x12f   : > { %1059 = vrot.lane.b32.xlu2 %v2754_v26, %s2437_s23  ;;  %1063 = vrot.lane.b32.xlu1 %v2745_v22, %s2437_s23  ;;  %vm1288_vm10 = vmand %vm1254_vm4, %vm1272_vm5  ;;  %vm1103_vm4 = vcmask 130048  }
 0x130   : > { %1067 = vrot.lane.b32.xlu0 %v2750_v25, %s2437_s23  ;;  %v1304_v44 = vsel %vm1288_vm10, 1, %v2438_v52  ;;  %vm1292_vm5 = vmand %vm1258_vm15, %vm1276_vm0  ;;  %vm1279_vm10 = vcmp.lt.s32.totalorder %v1244_v54, %v2740_v18  ;;  %vm1264_vm15 = vcmp.ge.s32.totalorder %v1247_v63, %v2738_v17  ;;  %vm1282_vm0 = vcmp.lt.s32.totalorder %v1247_v63, %v2740_v18 }
 0x131   : > { %v1308_v57 = vsel %vm1292_vm5, 1, %v2438_v52  ;;  %vm1295_vm12 = vmand %vm1261_vm9, %vm1279_vm10  ;;  %vm1283_vm5 = vcmp.lt.s32.totalorder %v1248_v5, %v2740_v18  ;;  %vm1396_vm9 = vcmask 15360  }
 0x132   : > { %v1311_v1 = vsel %vm1295_vm12, 1, %v2438_v52  ;;  %vm1298_vm2 = vmand %vm1264_vm15, %vm1282_vm0 }
 0x133   : > { %v1314_v8 = vsel %vm1298_vm2, 1, %v2438_v52  ;;  %vm1299_vm6 = vmand %vm1265_vm3, %vm1283_vm5 }
 0x134   : > { %v1315_v11 = vsel %vm1299_vm6, 1, %v2438_v52 }
 0x137   : > { %1065 = vrot.lane.b32.xlu2 %v2770_v30, %s2437_s23  ;;  %1317 = vperm.xlu1 %2271, %v1300_v31  }
 0x138   : > { %1323 = vperm.xlu0 %2273, %v1302_v34  }
 0x13f   : > { %1320 = vperm.xlu2 %2272, %v1301_v37   ;;  %1326 = vperm.xlu1 %2271, %v1303_v38  }
 0x140   : > { %1338 = vperm.xlu0 %2273, %v1307_v41  }
 0x147   : > { %1329 = vperm.xlu2 %2272, %v1304_v44   ;;  %1332 = vperm.xlu1 %2271, %v1305_v46  }
 0x148   : > { %1347 = vperm.xlu0 %2273, %v1310_v48  }
 0x149   : > { %v1038_v50 = vpop.permute.xlu0 %1037 }
 0x14a   : > { %v1085_v51 = vmul.f32 %v1038_v50, %v2640_v20 }
 0x14c   : > { %2158 = vmatmul.msk.f32.vlgmr.msra.gmra.mxu1 %vm1103_vm4, %v1085_v51 }
 0x14f   : > { %1335 = vperm.xlu2 %2272, %v1306_v56   ;;  %1341 = vperm.xlu1 %2271, %v1308_v57  }
 0x150   : > { %1356 = vperm.xlu0 %2273, %v1313_v58  }
 0x151   : > { %v1040_v59 = vpop.permute.xlu0 %1039  ;;  %v1046_v12 = vpop.permute.xlu2 %1045 }
 0x152   : > { %v1086_v60 = vmul.f32 %v1040_v59, %v2647_v24  ;;  %v1089_v13 = vmul.f32 %v1046_v12, %v2668_v36 }
 0x154   : > { %2159 = vmatmul.msk.f32.gmra.mxu1 %vm1103_vm4, %v1086_v60 }
 0x157   : > { %1344 = vperm.xlu2 %2272, %v1309_v0   ;;  %1350 = vperm.xlu1 %2271, %v1311_v1  }
 0x158   : > { %1638 = vrot.lane.b32.xlu0 %v2770_v30, %s2439_s12 }
 0x159   : > { %v1042_v2 = vpop.permute.xlu1 %1041  ;;  %v1048_v18 = vpop.permute.xlu2 %1047 }
 0x15a   : > { %v1087_v3 = vmul.f32 %v1042_v2, %v2654_v28  ;;  %v1090_v52 = vmul.f32 %v1048_v18, %v2675_v40 }
 0x15c   : > { %2160 = vmatmul.msk.f32.gmra.mxu1 %vm1103_vm4, %v1087_v3 }
 0x15f   : > { %1353 = vperm.xlu2 %2272, %v1312_v7   ;;  %1359 = vperm.xlu1 %2271, %v1314_v8  }
 0x160   : > { %1636 = vrot.lane.b32.xlu0 %v2745_v22, %s2439_s12 }
 0x161   : > { %v1044_v9 = vpop.permute.xlu1 %1043 }
 0x162   : > { %v1088_v10 = vmul.f32 %v1044_v9, %v2661_v32 }
 0x164   : > { %2161 = vmatmul.msk.f32.gmra.mxu1 %vm1103_vm4, %v1088_v10 }
 0x167   : > { %1362 = vperm.xlu2 %2272, %v1315_v11   ;;  %1640 = vrot.lane.b32.xlu1 %v2750_v25, %s2439_s12 }
 0x168   : > { %1626 = vrot.lane.b32.xlu0 %v2699_v55, %s2439_s12 }
 0x16c   : > { %2162 = vmatmul.msk.f32.gmra.mxu1 %vm1103_vm4, %v1089_v13 }
 0x16f   : > { %1634 = vrot.lane.b32.xlu2 %v2715_v4, %s2439_s12  ;;  %1630 = vrot.lane.b32.xlu1 %v2720_v6, %s2439_s12 }
 0x170   : > { %1624 = vrot.lane.b32.xlu0 %v2689_v49, %s2439_s12 }
 0x174   : > { %2163 = vmatmul.msk.f32.gmra.mxu1 %vm1103_vm4, %v1090_v52 }
 0x177   : > { %1632 = vrot.lane.b32.xlu2 %v2754_v26, %s2439_s12  ;;  %1628 = vrot.lane.b32.xlu1 %v2707_v61, %s2439_s12 }
 0x178   : > { %1614 = vrot.lane.b32.xlu0 %v2654_v28, %s2439_s12  ;;  %v1054_v28 = vpop.permute.xlu2 %1053 }
 0x179   : > { %v1050_v19 = vpop.permute.xlu0 %1049 }
 0x17a   : > { %v1091_v21 = vmul.f32 %v1050_v19, %v2682_v45 }
 0x17c   : > { %2164 = vmatmul.msk.f32.gmra.mxu1 %vm1103_vm4, %v1091_v21 }
 0x17f   : > { %1622 = vrot.lane.b32.xlu2 %v2682_v45, %s2439_s12  ;;  %1618 = vrot.lane.b32.xlu1 %v2668_v36, %s2439_s12  ;;  %v1093_v45 = vmul.f32 %v1054_v28, %v2699_v55 }
 0x180   : > { %1612 = vrot.lane.b32.xlu0 %v2647_v24, %s2439_s12 }
 0x181   : > { %v1052_v23 = vpop.permute.xlu1 %1051 }
 0x182   : > { %v1092_v15 = vmul.f32 %v1052_v23, %v2689_v49 }
 0x184   : > { %2165 = vmatmul.msk.f32.gmra.mxu1 %vm1103_vm4, %v1092_v15 }
 0x187   : > { %1620 = vrot.lane.b32.xlu2 %v2675_v40, %s2439_s12  ;;  %1616 = vrot.lane.b32.xlu1 %v2661_v32, %s2439_s12 }
 0x189   : > { %v1060_v40 = vpop.permute.xlu2 %1059 }
 0x18a   : > { %v1096_v32 = vmul.f32 %v1060_v40, %v2754_v26 }
 0x18c   : > { %2166 = vmatmul.msk.f32.gmra.mxu1 %vm1103_vm4, %v1093_v45 }
 0x18f   : > { %1610 = vrot.lane.b32.xlu2 %v2640_v20, %s2439_s12 }
 0x191   : > { %v1056_v24 = vpop.permute.xlu0 %1055  ;;  %v1066_v31 = vpop.permute.xlu2 %1065 }
 0x192   : > { %v1094_v36 = vmul.f32 %v1056_v24, %v2707_v61 }
 0x194   : > { %2167 = vmatmul.msk.f32.gmra.mxu1 %vm1103_vm4, %v1094_v36 }
 0x199   : > { %v1058_v49 = vpop.permute.xlu1 %1057  ;;  %v1062_v55 = vpop.permute.xlu0 %1061 }
 0x19a   : > { %v1095_v27 = vmul.f32 %v1058_v49, %v2720_v6  ;;  %v1097_v29 = vmul.f32 %v1062_v55, %v2715_v4  ;;  %v1099_v6 = vmul.f32 %v1066_v31, %v2770_v30  ;;  %v1321_v35 = vpop.permute.xlu2 %1320 }
 0x19b   : > { %vm1365_vm11 = vcmp.eq.s32.totalorder %v1321_v35, 1 }
 0x19c   : > { %2168 = vmatmul.msk.f32.gmra.mxu1 %vm1103_vm4, %v1095_v27 }
 0x1a1   : > { %v1064_v20 = vpop.permute.xlu1 %1063 }
 0x1a2   : > { %v1098_v61 = vmul.f32 %v1064_v20, %v2745_v22  ;;  %v1068_v33 = vpop.permute.xlu0 %1067  ;;  %v1330_v39 = vpop.permute.xlu2 %1329 }
 0x1a3   : > { %v1100_v26 = vmul.f32 %v1068_v33, %v2750_v25  ;;  %vm1368_vm8 = vcmp.eq.s32.totalorder %v1330_v39, 1 }
 0x1a4   : > { %2169 = vmatmul.msk.f32.gmra.mxu1 %vm1103_vm4, %v1096_v32 }
 0x1a9   : > { %v1318_v22 = vpop.permute.xlu1 %1317 }
 0x1aa   : > { %vm1364_vm7 = vcmp.eq.s32.totalorder %v1318_v22, 1  ;;  %v1324_v54 = vpop.permute.xlu0 %1323  ;;  %v1336_v58 = vpop.permute.xlu2 %1335 }
 0x1ab   : > { %vm1370_vm0 = vcmp.eq.s32.totalorder %v1336_v58, 1  ;;  %vm1366_vm1 = vcmp.eq.s32.totalorder %v1324_v54, 1 }
 0x1ac   : > { %2170 = vmatmul.msk.f32.gmra.mxu1 %vm1103_vm4, %v1097_v29 }
 0x1b1   : > { %v2906_v56 = vpop.permute.xlu1 %1326 }
 0x1b2   : > { %v1339_v59 = vpop.permute.xlu0 %1338  ;;  %v1345_v63 = vpop.permute.xlu2 %1344  ;;  %vm1367_vm3 = vcmp.eq.s32.totalorder %v2906_v56, 1 }
 0x1b3   : > { %vm1373_vm12 = vcmp.eq.s32.totalorder %v1345_v63, 1  ;;  %vm1371_vm2 = vcmp.eq.s32.totalorder %v1339_v59, 1 }
 0x1b4   : > { %2171 = vmatmul.msk.f32.gmra.mxu1 %vm1103_vm4, %v1098_v61 }
 0x1b9   : > { %v1333_v60 = vpop.permute.xlu1 %1332 }
 0x1ba   : > { %v1348_v0 = vpop.permute.xlu0 %1347  ;;  %vm1369_vm10 = vcmp.eq.s32.totalorder %v1333_v60, 1  ;;  %v1354_v11 = vpop.permute.xlu2 %1353 }
 0x1bb   : > { %vm1376_vm14 = vcmp.eq.s32.totalorder %v1354_v11, 1  ;;  %vm1374_vm5 = vcmp.eq.s32.totalorder %v1348_v0, 1 }
 0x1bc   : > { %2172 = vmatmul.msk.f32.gmra.mxu1 %vm1103_vm4, %v1099_v6 }
 0x1c1   : > { %v1342_v3 = vpop.permute.xlu1 %1341 }
 0x1c2   : > { %vm1372_vm13 = vcmp.eq.s32.totalorder %v1342_v3, 1  ;;  %v1357_v45 = vpop.permute.xlu0 %1356  ;;  %v1363_v58 = vpop.permute.xlu2 %1362 }
 0x1c3   : > { %vm1377_vm15 = vcmp.eq.s32.totalorder %v1357_v45, 1 }
 0x1c4   : > { %2173 = vmatmul.msk.f32.gmra.mxu1 %vm1103_vm4, %v1100_v26 }
 0x1c9   : > { %v1169_v34 = vpop.f32.mrf.mxu1  ;;  %v1351_v27 = vpop.permute.xlu1 %1350 }
 0x1ca   : > { %v1217_v38 = vmul.f32 0.35355338, %v1169_v34  ;;  %vm1375_vm6 = vcmp.eq.s32.totalorder %v1351_v27, 1 }
 0x1cc   : > { %v2898_v41 = vsel %vm1364_vm7, %v1217_v38, -1e+30 }
 0x1cd   : > { %v1397_v43 = vsel %vm1396_vm9, %v2898_v41, -inf }
 0x1d1   : > { %v1172_v16 = vpop.f32.mrf.mxu1 }
 0x1d2   : > { %v1218_v5 = vmul.f32 0.35355338, %v1172_v16 }
 0x1d4   : > { %v2910_v12 = vsel %vm1365_vm11, %v1218_v5, -1e+30  ;;  %vm1439_vm11 = vcmask 8192  }
 0x1d5   : > { %v1398_v21 = vsel %vm1396_vm9, %v2910_v12, -inf }
 0x1d9   : > { %v2894_v4 = vpop.f32.mrf.mxu1 }
 0x1da   : > { %v1219_v26 = vmul.f32 0.35355338, %v2894_v4 }
 0x1e1   : > { %v2896_v37 = vpop.f32.mrf.mxu1 }
 0x1e2   : > { %v1220_v16 = vmul.f32 0.35355338, %v2896_v37 }
 0x1e9   : > { %v1181_v30 = vpop.f32.mrf.mxu1 }
 0x1ea   : > { %v1221_v42 = vmul.f32 0.35355338, %v1181_v30 }
 0x1ec   : > { %v2900_v25 = vsel %vm1368_vm8, %v1221_v42, -1e+30  ;;  %v1382_v42 = vsel %vm1366_vm1, %v1219_v26, -1e+30  ;;  %vm1541_vm8 = vcmask 1041408  }
 0x1ed   : > { %v1401_v44 = vsel %vm1396_vm9, %v2900_v25, -inf }
 0x1ee   : > { %v1402_v46 = vmax.f32 %v1397_v43, %v1401_v44  ;;  %v1360_v43 = vpop.permute.xlu1 %1359  ;;  %v1383_v44 = vsel %vm1367_vm3, %v1220_v16, -1e+30 }
 0x1ef   : > { %vm1378_vm7 = vcmp.eq.s32.totalorder %v1360_v43, 1 }
 0x1f1   : > { %v1184_v47 = vpop.f32.mrf.mxu1 }
 0x1f2   : > { %v1222_v1 = vmul.f32 0.35355338, %v1184_v47 }
 0x1f4   : > { %v2908_v9 = vsel %vm1369_vm10, %v1222_v1, -1e+30  ;;  %vm1379_vm10 = vcmp.eq.s32.totalorder %v1363_v58, 1 }
 0x1f5   : > { %v1403_v52 = vsel %vm1396_vm9, %v2908_v9, -inf }
 0x1f6   : > { %v1404_v24 = vmax.f32 %v1398_v21, %v1403_v52 }
 0x1f9   : > { %v1187_v48 = vpop.f32.mrf.mxu1 }
 0x1fa   : > { %v1223_v31 = vmul.f32 0.35355338, %v1187_v48 }
 0x1fc   : > { %v2935_v38 = vsel %vm1370_vm0, %v1223_v31, -1e+30 }
 0x1fd   : > { %v1405_v37 = vsel %vm1396_vm9, %v2935_v38, -inf }
 0x201   : > { %v1190_v50 = vpop.f32.mrf.mxu1 }
 0x202   : > { %v1224_v6 = vmul.f32 0.35355338, %v1190_v50  ;;  %v2952_v50 = vld [vmem:[%s3184_s8] sm:$0x3] }
 0x203   : > { %2174 = vmatpush.msk.msra.mxu2 %vm1541_vm8, %v2952_v50 }
 0x204   : > { %v2937_v39 = vsel %vm1371_vm2, %v1224_v6, -1e+30 }
 0x205   : > { %v1407_v47 = vsel %vm1396_vm9, %v2937_v39, -inf }
 0x209   : > { %v1193_v51 = vpop.f32.mrf.mxu1 }
 0x20a   : > { %v1225_v7 = vmul.f32 0.35355338, %v1193_v51  ;;  %v1399_v51 = vsel %vm1396_vm9, %v1382_v42, -inf }
 0x20b   : > { %v1406_v59 = vmax.f32 %v1399_v51, %v1405_v37 }
 0x20c   : > { %v2912_v13 = vsel %vm1372_vm13, %v1225_v7, -1e+30 }
 0x20d   : > { %v1409_v23 = vsel %vm1396_vm9, %v2912_v13, -inf }
 0x20e   : > { %v1410_v40 = vmax.f32 %v1402_v46, %v1409_v23 }
 0x211   : > { %v1196_v53 = vpop.f32.mrf.mxu1 }
 0x212   : > { %v1226_v8 = vmul.f32 0.35355338, %v1196_v53  ;;  %v1400_v53 = vsel %vm1396_vm9, %v1383_v44, -inf }
 0x213   : > { %v1408_v60 = vmax.f32 %v1400_v53, %v1407_v47 }
 0x214   : > { %v2914_v18 = vsel %vm1373_vm12, %v1226_v8, -1e+30 }
 0x215   : > { %v1411_v15 = vsel %vm1396_vm9, %v2914_v18, -inf }
 0x216   : > { %v1412_v32 = vmax.f32 %v1404_v24, %v1411_v15 }
 0x219   : > { %v1199_v57 = vpop.f32.mrf.mxu1 }
 0x21a   : > { %v1227_v35 = vmul.f32 0.35355338, %v1199_v57 }
 0x21c   : > { %v2939_v46 = vsel %vm1374_vm5, %v1227_v35, -1e+30 }
 0x21d   : > { %v1413_v54 = vsel %vm1396_vm9, %v2939_v46, -inf }
 0x21e   : > { %v1414_v0 = vmax.f32 %v1406_v59, %v1413_v54 }
 0x221   : > { %v1202_v62 = vpop.f32.mrf.mxu1 }
 0x222   : > { %v1228_v22 = vmul.f32 0.35355338, %v1202_v62 }
 0x224   : > { %v2941_v4 = vsel %vm1375_vm6, %v1228_v22, -1e+30 }
 0x225   : > { %v1415_v56 = vsel %vm1396_vm9, %v2941_v4, -inf }
 0x226   : > { %v1416_v1 = vmax.f32 %v1408_v60, %v1415_v56 }
 0x229   : > { %v1205_v2 = vpop.f32.mrf.mxu1 }
 0x22a   : > { %v1229_v10 = vmul.f32 0.35355338, %v1205_v2 }
 0x22c   : > { %v2918_v19 = vsel %vm1376_vm14, %v1229_v10, -1e+30 }
 0x22d   : > { %v1417_v49 = vsel %vm1396_vm9, %v2918_v19, -inf }
 0x22e   : > { %v1418_v20 = vmax.f32 %v1410_v40, %v1417_v49 }
 0x231   : > { %v1208_v28 = vpop.f32.mrf.mxu1 }
 0x232   : > { %v1230_v36 = vmul.f32 0.35355338, %v1208_v28  ;;  %v2968_v28 = vld [vmem:[#allocation2] sm:$0x1] }
 0x234   : > { %v2928_v55 = vsel %vm1377_vm15, %v1230_v36, -1e+30 }
 0x235   : > { %v1419_v29 = vsel %vm1396_vm9, %v2928_v55, -inf }
 0x236   : > { %v1420_v61 = vmax.f32 %v1412_v32, %v1419_v29 }
 0x238   : > { %v1425_v33 = vmax.f32 %v1418_v20, %v1420_v61 }
 0x239   : > { %v1211_v34 = vpop.f32.mrf.mxu1 }
 0x23a   : > { %v1231_v30 = vmul.f32 0.35355338, %v1211_v34 }
 0x23c   : > { %v2947_v48 = vsel %vm1378_vm7, %v1231_v30, -1e+30 }
 0x23d   : > { %v1421_v63 = vsel %vm1396_vm9, %v2947_v48, -inf }
 0x23e   : > { %v1422_v5 = vmax.f32 %v1414_v0, %v1421_v63 }
 0x241   : > { %v1214_v57 = vpop.f32.mrf.mxu1 }
 0x242   : > { %v1232_v62 = vmul.f32 0.35355338, %v1214_v57 }
 0x244   : > { %v2964_v2 = vsel %vm1379_vm10, %v1232_v62, -1e+30 }
 0x245   : > { %v1423_v3 = vsel %vm1396_vm9, %v2964_v2, -inf }
 0x246   : > { %v1424_v7 = vmax.f32 %v1416_v1, %v1423_v3  ;;  %v1635_v1 = vpop.permute.xlu2 %1634 }
 0x248   : > { %v1426_v8 = vmax.f32 %v1422_v5, %v1424_v7 }
 0x24a   : > { %v1427_v10 = vmax.f32 %v1425_v33, %v1426_v8 }
 0x24c   : > { %v1428_v11 = vrot.slane %v1427_v10, 4 }
 0x24e   : > { %v1429_v52 = vmax.f32 %v1427_v10, %v1428_v11  ;;  %v1633_v8 = vpop.permute.xlu2 %1632 }
 0x250   : > { %v1430_v21 = vrot.slane %v1429_v52, 2 }
 0x252   : > { %v1431_v23 = vmax.f32 %v1429_v52, %v1430_v21  ;;  %v1641_v21 = vpop.permute.xlu1 %1640 }
 0x254   : > { %v1432_v15 = vrot.slane %v1431_v23, 1 }
 0x256   : > { %v1433_v45 = vmax.f32 %v1431_v23, %v1432_v15  ;;  %v1623_v23 = vpop.permute.xlu2 %1622 }
 0x258   : > { %v2971_v24 = vmax.f32 %v2968_v28, %v1433_v45 }
 0x25a   : > { %v1436_v36 = vsub.f32 %v2968_v28, %v2971_v24  ;;  %1440 = vst.msk [vmem:[#allocation2] sm:$0x1] %vm1439_vm11, %v2971_v24  ;;  %v2977_v49 = vperm.slane %v2971_v24, 0 }
 0x25c   : > { %v1459_v27 = vsub.f32 %v2964_v2, %v2977_v49  ;;  %v1444_v40 = vsub.f32 %v2898_v41, %v2977_v49  ;;  %v1445_v32 = vsub.f32 %v2910_v12, %v2977_v49  ;;  %v1446_v29 = vsub.f32 %v1382_v42, %v2977_v49 }
 0x25d   : > { %v1447_v20 = vsub.f32 %v1383_v44, %v2977_v49  ;;  %v1448_v61 = vsub.f32 %v2900_v25, %v2977_v49  ;;  %v1455_v6 = vsub.f32 %v2941_v4, %v2977_v49  ;;  %v1456_v33 = vsub.f32 %v2918_v19, %v2977_v49 }
 0x25e   : > { %v1460_v31 = vmul.f32 1.442695, %v1444_v40  ;;  %v1457_v41 = vsub.f32 %v2928_v55, %v2977_v49  ;;  %v1458_v12 = vsub.f32 %v2947_v48, %v2977_v49  ;;  %v1462_v26 = vmul.f32 1.442695, %v1445_v32  ;;  %v1631_v40 = vpop.permute.xlu1 %1630  ;;  %v1621_v32 = vpop.permute.xlu2 %1620 }
 0x25f   : > { %v1464_v25 = vmul.f32 1.442695, %v1446_v29  ;;  %v1466_v19 = vmul.f32 1.442695, %v1447_v20  ;;  %v1468_v55 = vmul.f32 1.442695, %v1448_v61  ;;  %v1449_v30 = vsub.f32 %v2908_v9, %v2977_v49 }
 0x260   : > { %2316 = vpow2.f32 %v1460_v31  ;;  %v1450_v44 = vsub.f32 %v2935_v38, %v2977_v49  ;;  %v1451_v9 = vsub.f32 %v2937_v39, %v2977_v49  ;;  %v1452_v38 = vsub.f32 %v2912_v13, %v2977_v49 }
 0x261   : > { %2318 = vpow2.f32 %v1462_v26  ;;  %v1470_v42 = vmul.f32 1.442695, %v1449_v30  ;;  %v1453_v39 = vsub.f32 %v2914_v18, %v2977_v49  ;;  %v1454_v13 = vsub.f32 %v2939_v46, %v2977_v49  ;;  %v3057_v46 = vpop.permute.xlu0 %1638 }
 0x262   : > { %2320 = vpow2.f32 %v1464_v25  ;;  %v1472_v4 = vmul.f32 1.442695, %v1450_v44  ;;  %v1474_v47 = vmul.f32 1.442695, %v1451_v9  ;;  %v1476_v51 = vmul.f32 1.442695, %v1452_v38 }
 0x263   : > { %2322 = vpow2.f32 %v1466_v19  ;;  %v1478_v54 = vmul.f32 1.442695, %v1453_v39  ;;  %v1480_v57 = vmul.f32 1.442695, %v1454_v13  ;;  %v1482_v59 = vmul.f32 1.442695, %v1455_v6 }
 0x264   : > { %2324 = vpow2.f32 %v1468_v55  ;;  %v1484_v18 = vmul.f32 1.442695, %v1456_v33  ;;  %v1486_v63 = vmul.f32 1.442695, %v1457_v41  ;;  %v1488_v5 = vmul.f32 1.442695, %v1458_v12 }
 0x265   : > { %2326 = vpow2.f32 %v1470_v42  ;;  %v1490_v11 = vmul.f32 1.442695, %v1459_v27 }
 0x266   : > { %v2997_v34 = vpop.eup %2316  ;;  %2328 = vpow2.f32 %v1472_v4  ;;  %v1629_v2 = vpop.permute.xlu1 %1628 }
 0x267   : > { %2175 = vmatmul.msk.f32.vlgmr.msra.gmra.mxu2 %vm1396_vm9, %v2997_v34  ;;  %v3001_v16 = vpop.eup %2318  ;;  %2330 = vpow2.f32 %v1474_v47  ;;  %v1611_v49 = vpop.permute.xlu2 %1610 }
 0x268   : > { %v3005_v35 = vpop.eup %2320  ;;  %2332 = vpow2.f32 %v1476_v51 }
 0x269   : > { %v3009_v22 = vpop.eup %2322  ;;  %2334 = vpow2.f32 %v1478_v54  ;;  %v1637_v3 = vpop.permute.xlu0 %1636 }
 0x26a   : > { %v3015_v43 = vpop.eup %2324  ;;  %2336 = vpow2.f32 %v1480_v57 }
 0x26b   : > { %v3021_v37 = vpop.eup %2326  ;;  %2338 = vpow2.f32 %v1482_v59 }
 0x26c   : > { %v3027_v48 = vpop.eup %2328  ;;  %2340 = vpow2.f32 %v1484_v18 }
 0x26d   : > { %v3033_v53 = vpop.eup %2330  ;;  %2342 = vpow2.f32 %v1486_v63 }
 0x26e   : > { %v3039_v56 = vpop.eup %2332  ;;  %2344 = vpow2.f32 %v1488_v5  ;;  %v1619_v41 = vpop.permute.xlu1 %1618 }
 0x26f   : > { %2176 = vmatmul.msk.f32.gmra.mxu2 %vm1396_vm9, %v3001_v16  ;;  %v3045_v58 = vpop.eup %2334  ;;  %2346 = vpow2.f32 %v1490_v11 }
 0x270   : > { %v3049_v60 = vpop.eup %2336 }
 0x271   : > { %v3053_v62 = vpop.eup %2338  ;;  %v3067_v10 = vpop.permute.xlu0 %1626 }
 0x272   : > { %v3059_v0 = vpop.eup %2340 }
 0x273   : > { %v3063_v7 = vpop.eup %2342 }
 0x274   : > { %v3072_v52 = vpop.eup %2344 }
 0x275   : > { %v3076_v15 = vpop.eup %2346 }
 0x276   : > { %v1617_v26 = vpop.permute.xlu1 %1616 }
 0x277   : > { %2177 = vmatmul.msk.f32.gmra.mxu2 %vm1396_vm9, %v3005_v35 }
 0x279   : > { %v1625_v45 = vpop.permute.xlu0 %1624 }
 0x27f   : > { %2178 = vmatmul.msk.f32.gmra.mxu2 %vm1396_vm9, %v3009_v22 }
 0x281   : > { %v1615_v29 = vpop.permute.xlu0 %1614 }
 0x287   : > { %2179 = vmatmul.msk.f32.gmra.mxu2 %vm1396_vm9, %v3015_v43 }
 0x289   : > { %v1613_v27 = vpop.permute.xlu0 %1612 }
 0x28f   : > { %2180 = vmatmul.msk.f32.gmra.mxu2 %vm1396_vm9, %v3021_v37 }
 0x297   : > { %2181 = vmatmul.msk.f32.gmra.mxu2 %vm1396_vm9, %v3027_v48 }
 0x29f   : > { %2182 = vmatmul.msk.f32.gmra.mxu2 %vm1396_vm9, %v3033_v53 }
 0x2a7   : > { %2183 = vmatmul.msk.f32.gmra.mxu2 %vm1396_vm9, %v3039_v56 }
 0x2af   : > { %2184 = vmatmul.msk.f32.gmra.mxu2 %vm1396_vm9, %v3045_v58 }
 0x2b7   : > { %2185 = vmatmul.msk.f32.gmra.mxu2 %vm1396_vm9, %v3049_v60 }
 0x2bf   : > { %2186 = vmatmul.msk.f32.gmra.mxu2 %vm1396_vm9, %v3053_v62 }
 0x2c7   : > { %2187 = vmatmul.msk.f32.gmra.mxu2 %vm1396_vm9, %v3059_v0 }
 0x2cf   : > { %2188 = vmatmul.msk.f32.gmra.mxu2 %vm1396_vm9, %v3063_v7 }
 0x2d7   : > { %2189 = vmatmul.msk.f32.gmra.mxu2 %vm1396_vm9, %v3072_v52 }
 0x2df   : > { %2190 = vmatmul.msk.f32.gmra.mxu2 %vm1396_vm9, %v3076_v15 }
 0x2ea   : > { %v1562_v20 = vpop.f32.mrf.mxu2 }
 0x2eb   : > { %v1658_v31 = vmul.f32 %v1611_v49, %v1562_v20 }
 0x2f2   : > { %v1565_v61 = vpop.f32.mrf.mxu2 }
 0x2f3   : > { %v1659_v6 = vmul.f32 %v1613_v27, %v1565_v61 }
 0x2f5   : > { %v2309_v33 = vpack.i.bf16 %v1659_v6, %v1658_v31 }
 0x2fa   : > { %v1568_v12 = vpop.f32.mrf.mxu2 }
 0x2fb   : > { %v1660_v19 = vmul.f32 %v1615_v29, %v1568_v12 }
 0x302   : > { %v1571_v25 = vpop.f32.mrf.mxu2 }
 0x303   : > { %v1661_v55 = vmul.f32 %v1617_v26, %v1571_v25 }
 0x305   : > { %v2304_v30 = vpack.i.bf16 %v1661_v55, %v1660_v19 }
 0x30a   : > { %v1574_v42 = vpop.f32.mrf.mxu2 }
 0x30b   : > { %v1662_v63 = vmul.f32 %v1619_v41, %v1574_v42 }
 0x312   : > { %v1577_v44 = vpop.f32.mrf.mxu2 }
 0x313   : > { %v1663_v59 = vmul.f32 %v1621_v32, %v1577_v44 }
 0x315   : > { %v2299_v5 = vpack.i.bf16 %v1663_v59, %v1662_v63 }
 0x31a   : > { %v1580_v4 = vpop.f32.mrf.mxu2 }
 0x31b   : > { %v1664_v31 = vmul.f32 %v1623_v23, %v1580_v4 }
 0x322   : > { %v1583_v9 = vpop.f32.mrf.mxu2 }
 0x323   : > { %v1665_v27 = vmul.f32 %v1625_v45, %v1583_v9 }
 0x325   : > { %v2294_v6 = vpack.i.bf16 %v1665_v27, %v1664_v31  ;;  %v1763_v27 = vshrl.u32 %v984_v14, 7 }
 0x32a   : > { %v1586_v47 = vpop.f32.mrf.mxu2 }
 0x32b   : > { %v1666_v41 = vmul.f32 %v3067_v10, %v1586_v47 }
 0x332   : > { %v1589_v38 = vpop.f32.mrf.mxu2 }
 0x333   : > { %v1667_v32 = vmul.f32 %v1629_v2, %v1589_v38 }
 0x335   : > { %v2289_v25 = vpack.i.bf16 %v1667_v32, %v1666_v41 }
 0x33a   : > { %v1592_v51 = vpop.f32.mrf.mxu2 }
 0x33b   : > { %v1668_v54 = vmul.f32 %v1631_v40, %v1592_v51 }
 0x342   : > { %v1595_v39 = vpop.f32.mrf.mxu2 }
 0x343   : > { %v1669_v13 = vmul.f32 %v1633_v8, %v1595_v39 }
 0x345   : > { %v2284_v57 = vpack.i.bf16 %v1669_v13, %v1668_v54 }
 0x347   : > { %2285 = vrot.lane.b32.xlu0 %v2284_v57, %s2440_s19 }
 0x34a   : > { %v1598_v18 = vpop.f32.mrf.mxu2 }
 0x34b   : > { %v1670_v29 = vmul.f32 %v1635_v1, %v1598_v18 }
 0x34f   : > { %2300 = vrot.lane.b32.xlu0 %v2299_v5, %s2440_s19 }
 0x352   : > { %v1601_v11 = vpop.f32.mrf.mxu2 }
 0x353   : > { %v1671_v20 = vmul.f32 %v1637_v3, %v1601_v11 }
 0x355   : > { %v2279_v49 = vpack.i.bf16 %v1671_v20, %v1670_v29 }
 0x357   : > { %2280 = vrot.lane.b32.xlu2 %v2279_v49, %s2440_s19 }
 0x35a   : > { %v1604_v61 = vpop.f32.mrf.mxu2 }
 0x35b   : > { %v1672_v8 = vmul.f32 %v3057_v46, %v1604_v61 }
 0x35f   : > { %2295 = vrot.lane.b32.xlu2 %v2294_v6, %s2440_s19 }
 0x362   : > { %v1607_v40 = vpop.f32.mrf.mxu2 }
 0x363   : > { %v1673_v12 = vmul.f32 %v1641_v21, %v1607_v40  ;;  %v1764_v40 = vadd.s32 %v1763_v27, %v2738_v17  ;;  %v2441_v17 = vmov 1.0|1.0  }
 0x365   : > { %v2274_v26 = vpack.i.bf16 %v1673_v12, %v1672_v8 }
 0x367   : > { %2275 = vrot.lane.b32.xlu1 %v2274_v26, %s2440_s19  ;;  %2310 = vrot.lane.b32.xlu2 %v2309_v33, %s2440_s19 }
 0x36f   : > { %2290 = vrot.lane.b32.xlu1 %v2289_v25, %s2440_s19 }
 0x377   : > { %2305 = vrot.lane.b32.xlu1 %v2304_v30, %s2440_s19 }
 0x3b1   : > { %v2281_v1 = vpop.permute.xlu2 %2280 }
 0x3b2   : > { %v2283_v45 = vunpack.i.h.bf16 %v2281_v1  ;;  %v2282_v19 = vunpack.i.l.bf16 %v2281_v1 }
 0x3b4   : > { %v1750_v10 = vsel %vm1396_vm9, %v3059_v0, %v2282_v19  ;;  %v1751_v30 = vsel %vm1396_vm9, %v3063_v7, %v2283_v45 }
 0x3b5   : > { %v1760_v9 = vpack.c.bf16 %v1751_v30, %v1750_v10 }
 0x3b9   : > { %v2286_v42 = vpop.permute.xlu0 %2285  ;;  %v2296_v51 = vpop.permute.xlu2 %2295 }
 0x3ba   : > { %v2288_v2 = vunpack.i.h.bf16 %v2286_v42  ;;  %v2287_v44 = vunpack.i.l.bf16 %v2286_v42  ;;  %v2298_v54 = vunpack.i.h.bf16 %v2296_v51  ;;  %v2297_v13 = vunpack.i.l.bf16 %v2296_v51 }
 0x3c1   : > { %v2301_v57 = vpop.permute.xlu0 %2300  ;;  %v2311_v49 = vpop.permute.xlu2 %2310 }
 0x3c2   : > { %v2303_v18 = vunpack.i.h.bf16 %v2301_v57  ;;  %v2302_v63 = vunpack.i.l.bf16 %v2301_v57  ;;  %v2313_v61 = vunpack.i.h.bf16 %v2311_v49  ;;  %v2312_v31 = vunpack.i.l.bf16 %v2311_v49 }
 0x3c4   : > { %v1743_v20 = vsel %vm1396_vm9, %v3021_v37, %v2303_v18  ;;  %v1738_v14 = vsel %vm1396_vm9, %v2997_v34, %v2312_v31  ;;  %v1739_v8 = vsel %vm1396_vm9, %v3001_v16, %v2313_v61  ;;  %v1807_v16 = vld [vmem:[#allocation3] sm:$0xff] }
 0x3d9   : > { %v2276_v3 = vpop.permute.xlu1 %2275 }
 0x3da   : > { %v2278_v23 = vunpack.i.h.bf16 %v2276_v3  ;;  %v2277_v55 = vunpack.i.l.bf16 %v2276_v3  ;;  %v1813_v3 = vld [vmem:[#allocation4] sm:$0xff] }
 0x3dc   : > { %v1752_v46 = vsel %vm1396_vm9, %v3072_v52, %v2277_v55  ;;  %v1753_v21 = vsel %vm1396_vm9, %v3076_v15, %v2278_v23  ;;  %v1748_v52 = vsel %vm1396_vm9, %v3049_v60, %v2287_v44  ;;  %v1749_v15 = vsel %vm1396_vm9, %v3053_v62, %v2288_v2 }
 0x3dd   : > { %v1761_v33 = vpack.c.bf16 %v1753_v21, %v1752_v46  ;;  %v1759_v39 = vpack.c.bf16 %v1749_v15, %v1748_v52  ;;  %v1744_v60 = vsel %vm1396_vm9, %v3027_v48, %v2297_v13  ;;  %v1745_v62 = vsel %vm1396_vm9, %v3033_v53, %v2298_v54 }
 0x3de   : > { %v1757_v11 = vpack.c.bf16 %v1745_v62, %v1744_v60 }
 0x3df   : > { %1771 = vmatpush.bf16.msrb.mxu3 %v1761_v33 }
 0x3e1   : > { %v2291_v4 = vpop.permute.xlu1 %2290 }
 0x3e2   : > { %v2293_v47 = vunpack.i.h.bf16 %v2291_v4  ;;  %v2292_v38 = vunpack.i.l.bf16 %v2291_v4 }
 0x3e3   : > { %1772 = vmatpush.bf16.msrb.mxu3 %v1760_v9 }
 0x3e4   : > { %v1746_v0 = vsel %vm1396_vm9, %v3039_v56, %v2292_v38  ;;  %v1747_v7 = vsel %vm1396_vm9, %v3045_v58, %v2293_v47  ;;  %v1742_v58 = vsel %vm1396_vm9, %v3015_v43, %v2302_v63  ;;  %v2315_v43 = vld [vmem:[%s742_s1] ss:$0 sm:$0xff] }
 0x3e5   : > { %v1758_v59 = vpack.c.bf16 %v1747_v7, %v1746_v0  ;;  %v1756_v48 = vpack.c.bf16 %v1743_v20, %v1742_v58  ;;  %vm1767_vm12 = vcmp.eq.s32.totalorder %v1764_v40, %v2315_v43 }
 0x3e6   : > { %vm2192_vm13 = vmpackc.low %vm1767_vm12, %vm1767_vm12 }
 0x3e7   : > { %1773 = vmatpush.bf16.msrb.mxu3 %v1759_v39 }
 0x3e9   : > { %v2306_v5 = vpop.permute.xlu1 %2305 }
 0x3ea   : > { %v2308_v29 = vunpack.i.h.bf16 %v2306_v5  ;;  %v2307_v56 = vunpack.i.l.bf16 %v2306_v5 }
 0x3eb   : > { %1774 = vmatpush.bf16.msrb.mxu3 %v1758_v59 }
 0x3ec   : > { %v1740_v53 = vsel %vm1396_vm9, %v3005_v35, %v2307_v56  ;;  %v1741_v6 = vsel %vm1396_vm9, %v3009_v22, %v2308_v29  ;;  %v1754_v35 = vpack.c.bf16 %v1739_v8, %v1738_v14  ;;  %v1437_v22 = vmul.f32 1.442695, %v1436_v36 }
 0x3ed   : > { %v1755_v37 = vpack.c.bf16 %v1741_v6, %v1740_v53 }
 0x3ee   : > { %2348 = vpow2.f32 %v1437_v22 }
 0x3ef   : > { %1775 = vmatpush.bf16.msrb.mxu3 %v1757_v11 }
 0x3f3   : > { %1776 = vmatpush.bf16.msrb.mxu3 %v1756_v48 }
 0x3f4   : > { %v2349_v12 = vpop.eup %2348 }
 0x3f5   : > { %v1808_v34 = vperm.slane %v2349_v12, 0 }
 0x3f7   : > { %1777 = vmatpush.bf16.msrb.mxu3 %v1755_v37  ;;  %v1810_v26 = vmul.f32 %v1808_v34, %v1807_v16 }
 0x3fb   : > { %1778 = vmatpush.bf16.msrb.mxu3 %v1754_v35 }
 0x3fe   : > { %2193 = vmatmul.msk.bf16.vlgmr.msrb.gmra.mxu3 %vm2192_vm13, %v2441_v17 }
 0x3ff   : > { %2194 = vmatpush.msk.msra.mxu3 %vm1541_vm8, %v2952_v50 }
 0x40e   : > { %2195 = vmatmul.msk.f32.vlgmr.msra.gmra.mxu3 %vm1396_vm9, %v2349_v12 }
 0x481   : > { %v1780_v32 = vpop.f32.mrf.mxu3 }
 0x482   : > { %v1811_v41 = vadd.f32 %v1810_v26, %v1780_v32  ;;  %1817 = vrot.lane.b32.xlu0 %v1780_v32, %s2442_s29 }
 0x484   : > { %1812 = vst.msk [vmem:[#allocation3] sm:$0xff] %vm1396_vm9, %v1811_v41 }
 0x489   : > { %v1782_v50 = vpop.f32.mrf.mxu3 }
 0x491   : > { %v1804_v25 = vpop.f32.mrf.mxu3 }
 0x492   : > { %v1814_v1 = vperm.slane %v1804_v25, 0 }
 0x494   : > { %v1815_v45 = vmul.f32 %v1814_v1, %v1813_v3 }
 0x4f4   : > { %v1818_v28 = vpop.permute.xlu0 %1817 }
 0x4f5   : > { %v1820_v24 = vadd.f32 %v1818_v28, %v1815_v45 }
 0x4f7   : > { %1821 = vst.msk [vmem:[#allocation4] sm:$0xff] %vm1103_vm4, %v1820_v24 }
 0x4f8 PF: > { %s1822_s1 = sand.u32 4, %s2567_s17 }
 0x4f9   : > { %p2196_p12 = scmp.eq.s32.totalorder %s1822_s1, 0 }
 0x4fa   : > { %s3210_s0 = sld [smem:[#allocation17_spill]] (!%p2196_p12) }
 0x4fb   : > { %1826 = sbr.rel (%p2196_p12) target bundleno = 1691 (0x69b), region = 84  ;;  %s3211_s24 = sld [smem:[#allocation18_spill]] (!%p2196_p12) }
 0x500   : > { %v1832_v36 = vld [vmem:[%s3184_s8] sm:$0x3]  ;;  %vm1837_vm14 = vcmask 1041408   ;;  %vm1833_vm15 = vcmask 15360   ;;  %v1863_v42 = vld [vmem:[%s3187_s11 + $0x8] sm:$0xff]  ;;  %vm1867_vm4 = vcmask 130048  }
 0x501   : > { %v1827_v19 = vld [vmem:[#allocation3] sm:$0xff]  ;;  %2197 = vmatpush.msk.msra.mxu0 %vm1837_vm14, %v1832_v36  ;;  %1908 = vmatpush.msra.mxu2 %v1863_v42  ;;  %v1831_v44 = vld [vmem:[#allocation4] sm:$0xff]  ;;  %v2350_v38 = vld [vmem:[%s3189_s13] ss:$0 sm:$0xff] }
 0x502   : > { %2352 = vrcp.f32 %v1827_v19  ;;  %vm1828_vm9 = vcmp.gt.f32.partialorder %v1827_v19, 0.0  ;;  %v1862_v46 = vld [vmem:[%s3187_s11] sm:$0xff]  ;;  %v1866_v21 = vld [vmem:[%s3210_s0 + $0x8] sm:$0xff] }
 0x503   : > { %1909 = vmatpush.msra.mxu2 %v1862_v46  ;;  %v1865_v33 = vld [vmem:[%s3210_s0] sm:$0xff]  ;;  %1885 = vmatpush.msra.mxu1 %v1866_v21  ;;  %v1921_v4 = vld [vmem:[%s3190_s14 + $0x8] sm:$0xff] }
 0x504   : > { %v1864_v2 = vld [vmem:[%s2592_s20] sm:$0xff]  ;;  %1943 = vmatpush.msra.mxu3 %v1921_v4 }
 0x505   : > { %1886 = vmatpush.msra.mxu1 %v1865_v33  ;;  %v1920_v9 = vld [vmem:[%s3190_s14] sm:$0xff] }
 0x506   : > { %2199 = vmatmul.msk.f32.vlgmr.msra.gmra.mxu1 %vm1867_vm4, %v1864_v2  ;;  %1944 = vmatpush.msra.mxu3 %v1920_v9  ;;  %v2351_v54 = vld [vmem:[%s3211_s24] ss:$0 sm:$0xff] }
 0x508   : > { %v2353_v23 = vpop.eup %2352 }
 0x509   : > { %v1830_v55 = vsel %vm1828_vm9, %v2353_v23, 0.0 }
 0x50a   : > { %2198 = vmatmul.msk.f32.vlgmr.msra.gmra.mxu0 %vm1833_vm15, %v1830_v55 }
 0x583   : > { %v1888_v47 = vpop.f32.mrf.mxu1 }
 0x587   : > { %v1858_v10 = vpop.f32.mrf.mxu0 }
 0x588   : > { %v1861_v30 = vmul.f32 %v1858_v10, %v1831_v44 }
 0x58a   : > { %2200 = vmatmul.msk.f32.vlgmr.msra.gmra.mxu2 %vm1867_vm4, %v1861_v30 }
 0x60d   : > { %v1911_v52 = vpop.f32.mrf.mxu2 }
 0x60e   : > { %v1912_v15 = vadd.f32 %v1911_v52, %v1888_v47 }
 0x610   : > { %v1918_v51 = vadd.f32 %v2350_v38, %v1912_v15 }
 0x612   : > { %v1919_v39 = vmax.f32 %v1918_v51, 0.0 }
 0x614   : > { %2201 = vmatmul.msk.f32.vlgmr.msra.gmra.mxu3 %vm1867_vm4, %v1919_v39 }
 0x697   : > { %v1946_v13 = vpop.f32.mrf.mxu3 }
 0x698   : > { %v1947_v0 = vadd.f32 %v2351_v54, %v1946_v13 }
 0x69a   : > { %1949 = vst.msk [vmem:[%s2597_s3] sm:$0xff] %vm1867_vm4, %v1947_v0 }
 0x69b PF: > { %s3212_s25 = sld [smem:[#allocation12_spill]] }
 0x69c   : > { %s3213_s18 = sld [smem:[#allocation10_spill]] }
 0x69d   : > { %s3214_s19 = sld [smem:[#allocation11_spill]] }
 0x69e   : > { %s3215_s1 = sld [smem:[#allocation13_spill]] }
 0x69f   : > { %s3216_s20 = sld [smem:[#allocation14_spill]] }
 0x6a1   : > { %s44_s12 = sadd.s32 1, %s3212_s25  }
 0x6a2   : > { %p41_p13 = scmp.ge.s32.totalorder %s44_s12, 10  }
 0x6a4   :  { %43 = sbr.rel (!%p41_p13) target bundleno = 21 (0x15), region = 123 }

</bundles_post_ra>
